<compile_context>
chip_gen: v7x
topology: tpu7x:2x2x1
jax: 0.10.0
libtpu: 0.0.40
codegen_flags: <defaults>
</compile_context>

<pallas_src>
import numpy as np
import jax
import jax.numpy as jnp
from jax.experimental import pallas as pl
from jax.experimental.pallas import tpu as pltpu

# ----------------------------- configuration (small synthetic shapes) -----------------------------
B = 2                 # batch
CIN = 4               # input image channels
IMG = 64              # image H = W
FEAT_STRIDE = 16      # RoIAlign spatial_scale = 1/16
DOUT = 32             # dout_base_model (backbone feature channels)
RPN_DIM = 32          # RPN conv channels
ANCHOR_SCALES = (1, 2, 4)
NUM_ANCHORS = len(ANCHOR_SCALES)
N_ROIS = 8            # proposals kept per image
POOL = 4              # pooling_size
HIDDEN = 64           # _head_to_tail hidden dim
CLASSES = ("__background__", "person", "car", "dog")
N_CLASSES = len(CLASSES)
BBOX_STDS = (0.1, 0.1, 0.2, 0.2)
BBOX_MEANS = (0.0, 0.0, 0.0, 0.0)
THRESH = 0.05
NMS_THRESH = 0.3

# Lane padding: 128 everywhere at these tiny head widths.  At real shapes pick TN in multiples of
# 256 on v6e/v7x (2x256 MXU) for the big matmuls and keep 128 only for genuinely tiny heads.
LANE = 128
DOUTP = 128           # backbone feature channels padded to a full lane group (lane-dense stores)
HEAD_RPN_P = 128      # fused RPN head lanes: [fg-bg (A) | bbox deltas (4A) | pad]
HEAD_RCNN_P = 128     # fused RCNN head lanes: [cls (n_classes) | bbox (4*n_classes) | pad]
VMEM_LIMIT = 32 * 1024 * 1024
BBOX_XFORM_CLIP = float(np.log(1000.0 / 16.0))


def _round_up(v, m):
    return ((v + m - 1) // m) * m


# ----------------------------- backbone /16 conv as a per-image lane-dense matmul -----------------------------
def backbone_conv_pallas(patches_bf16, w_bf16, b_f32):
    """patches_bf16: (B, Ho*Wo, kh*kw*Cin) bf16 down-sampled taps (stride >= kernel: volume <= input)
    w_bf16: (kh*kw*Cin, DOUTP) bf16, output channels zero-padded to 128 lanes
    b_f32 : (1, DOUTP) f32.   Returns (B, Ho*Wo, DOUTP) f32 with fused bias + ReLU.
    grid over images -> 2 'parallel' tiles (both v7x TensorCores busy)."""
    Bn, M, K = patches_bf16.shape
    Np = w_bf16.shape[1]

    def kernel(x_ref, w_ref, b_ref, o_ref):
        acc = jnp.dot(x_ref[0, :, :], w_ref[...], preferred_element_type=jnp.float32)
        o_ref[0, :, :] = jnp.maximum(acc + b_ref[...], 0.0)

    return pl.pallas_call(
        kernel,
        out_shape=jax.ShapeDtypeStruct((Bn, M, Np), jnp.float32),
        grid=(Bn,),
        in_specs=[pl.BlockSpec((1, M, K), lambda b: (b, 0, 0)),
                  pl.BlockSpec((K, Np), lambda b: (0, 0)),
                  pl.BlockSpec((1, Np), lambda b: (0, 0))],
        out_specs=pl.BlockSpec((1, M, Np), lambda b: (b, 0, 0)),
        compiler_params=pltpu.CompilerParams(
            dimension_semantics=("parallel",),
            vmem_limit_bytes=VMEM_LIMIT),
    )(patches_bf16, w_bf16, b_f32)
    # TODO(synk): at real backbone / fc6 scale (K up to 25088, N=4096) this needs a K grid axis with an
    # f32 accumulator scratch, tiles sized for v7x's 64 MiB VMEM (e.g. TM=256, TK~512, TN~512), TN
    # multiples of 256 on v6e, and pipeline_mode=pl.Buffered(1) on the grid-invariant weight blocks.


# ----------------------------- fused RPN: 3x3 conv + ReLU + 1x1 cls/bbox head (ONE kernel) -----------------------------
def rpn_fused_pallas(base_pad, w_conv, b_conv, w_head, b_head, Hf, Wf, A):
    """base_pad: (B, Hf+2, Wf+2, DOUTP) f32 spatially zero-padded, channel lane-padded base feature
    w_conv: (3,3,DOUTP,RPN_DIM) bf16   b_conv: (1,RPN_DIM) f32
    w_head: (RPN_DIM, HEAD_RPN_P) bf16 lanes = [w_fg - w_bg per anchor (A) | bbox deltas (4A) | pad]
    b_head: (1, HEAD_RPN_P) f32
    Returns (B, Hf*Wf, HEAD_RPN_P) f32; first A lanes = softmax fg prob (== sigmoid(fg-bg), exact),
    lanes A..5A = bbox deltas.  No rpn_feat intermediate ever hits HBM."""
    Bn, Hp, Wp, Cp = base_pad.shape
    kh, kw, _, Cr = w_conv.shape
    Np = w_head.shape[1]
    HW = Hf * Wf

    def kernel(x_ref, wc_ref, bc_ref, wh_ref, bh_ref, o_ref):
        # conv: kh*kw whole-plane shifted MXU dots (M = Hf*Wf), bias hoisted into the acc init
        acc = jnp.broadcast_to(bc_ref[...], (HW, Cr)).astype(jnp.float32)
        for i in range(kh):                               # static 3x3 unroll (9 dots total)
            for j in range(kw):
                plane = x_ref[0, i:i + Hf, j:j + Wf, :].reshape(HW, Cp).astype(jnp.bfloat16)
                acc = acc + jnp.dot(plane, wc_ref[i, j, :, :],
                                    preferred_element_type=jnp.float32)
        rpn_feat = jnp.maximum(acc, 0.0).astype(jnp.bfloat16)
        head = jnp.dot(rpn_feat, wh_ref[...], preferred_element_type=jnp.float32) + bh_ref[...]
        # sigmoid over the full 128-lane group (one vreg column group; only the first A lanes are kept)
        lane = jax.lax.broadcasted_iota(jnp.int32, head.shape, 1)
        sig = 1.0 / (1.0 + jnp.exp(-head))                # exact sigmoid (no approx reciprocal)
        o_ref[0, :, :] = jnp.where(lane < A, sig, head)   # lane-dense (128) store

    return pl.pallas_call(
        kernel,
        out_shape=jax.ShapeDtypeStruct((Bn, HW, Np), jnp.float32),
        grid=(Bn,),
        in_specs=[pl.BlockSpec((1, Hp, Wp, Cp), lambda b: (b, 0, 0, 0)),
                  pl.BlockSpec((kh, kw, Cp, Cr), lambda b: (0, 0, 0, 0)),
                  pl.BlockSpec((1, Cr), lambda b: (0, 0)),
                  pl.BlockSpec((Cr, Np), lambda b: (0, 0)),
                  pl.BlockSpec((1, Np), lambda b: (0, 0))],
        out_specs=pl.BlockSpec((1, HW, Np), lambda b: (b, 0, 0)),
        compiler_params=pltpu.CompilerParams(
            dimension_semantics=("parallel",),
            vmem_limit_bytes=VMEM_LIMIT),
    )(base_pad, w_conv, b_conv, w_head, b_head)


# ----------------------------- fused RCNN head: fc1 -> fc2 -> [softmax(cls) | bbox_pred] -----------------------------
def rcnn_head_fused_pallas(pooled_bf16, w1, b1, w2, b2, w3, b3, rows_per_image):
    """pooled_bf16: (R, K) bf16; weights bf16; biases f32 (1,N).  All three matmuls chained in one
    kernel (weights < 100 KB -> trivially VMEM-resident); grid over images (2 'parallel' tiles).
    Output (R, HEAD_RCNN_P) f32: first n_classes lanes = exact softmax probs, next 4*n_classes = bbox."""
    R, K = pooled_bf16.shape
    H1 = w1.shape[1]
    H2 = w2.shape[1]
    Np = w3.shape[1]
    TR = rows_per_image

    def kernel(x_ref, w1_ref, b1_ref, w2_ref, b2_ref, w3_ref, b3_ref, o_ref):
        h = jnp.dot(x_ref[...], w1_ref[...], preferred_element_type=jnp.float32) + b1_ref[...]
        h = jnp.maximum(h, 0.0).astype(jnp.bfloat16)
        h = jnp.dot(h, w2_ref[...], preferred_element_type=jnp.float32) + b2_ref[...]
        h = jnp.maximum(h, 0.0).astype(jnp.bfloat16)
        acc = jnp.dot(h, w3_ref[...], preferred_element_type=jnp.float32) + b3_ref[...]
        lane = jax.lax.broadcasted_iota(jnp.int32, acc.shape, 1)
        is_cls = lane < N_CLASSES
        logits = jnp.where(is_cls, acc, -1e30)
        m = jnp.max(logits, axis=-1, keepdims=True)
        e = jnp.where(is_cls, jnp.exp(logits - m), 0.0)
        prob = e / jnp.sum(e, axis=-1, keepdims=True)     # exact masked softmax
        o_ref[...] = jnp.where(is_cls, prob, acc)         # lane-dense (128) store

    return pl.pallas_call(
        kernel,
        out_shape=jax.ShapeDtypeStruct((R, Np), jnp.float32),
        grid=(R // TR,),
        in_specs=[pl.BlockSpec((TR, K), lambda b: (b, 0)),
                  pl.BlockSpec((K, H1), lambda b: (0, 0)),
                  pl.BlockSpec((1, H1), lambda b: (0, 0)),
                  pl.BlockSpec((H1, H2), lambda b: (0, 0)),
                  pl.BlockSpec((1, H2), lambda b: (0, 0)),
                  pl.BlockSpec((H2, Np), lambda b: (0, 0)),
                  pl.BlockSpec((1, Np), lambda b: (0, 0))],
        out_specs=pl.BlockSpec((TR, Np), lambda b: (b, 0)),
        compiler_params=pltpu.CompilerParams(
            dimension_semantics=("parallel",),
            vmem_limit_bytes=VMEM_LIMIT),
    )(pooled_bf16, w1, b1, w2, b2, w3, b3)


# ----------------------------- bbox decode (coords on sublanes, ROIs on lanes) -----------------------------
def bbox_decode_pallas(boxes, deltas, stds, means, clip_hw):
    """bbox_transform_inv + target de-normalization + clip_boxes.  boxes/deltas: (M,4).
    Layout: 4 coords on sublanes (full-dim block, no dead sublane rows), ROIs on lanes (padded to 128);
    output is (4, Mp) only — the previous dead 4..7 zero-store is gone (halves writeback)."""
    M = boxes.shape[0]
    TL = min(_round_up(max(M, 1), LANE), 2048)
    Mp = _round_up(max(M, 1), TL)
    bT = jnp.pad(boxes.T.astype(jnp.float32), ((0, 0), (0, Mp - M)))     # (4, Mp)
    dT = jnp.pad(deltas.T.astype(jnp.float32), ((0, 0), (0, Mp - M)))    # (4, Mp)
    max_y, max_x = float(clip_hw[0]), float(clip_hw[1])
    s = [float(v) for v in stds]
    mu = [float(v) for v in means]

    def kernel(b_ref, d_ref, o_ref):
        x1 = b_ref[0:1, :]
        y1 = b_ref[1:2, :]
        x2 = b_ref[2:3, :]
        y2 = b_ref[3:4, :]
        w = x2 - x1 + 1.0
        h = y2 - y1 + 1.0
        cx = x1 + 0.5 * w
        cy = y1 + 0.5 * h
        dx = d_ref[0:1, :] * s[0] + mu[0]
        dy = d_ref[1:2, :] * s[1] + mu[1]
        # numerical-safety clamp on log-space deltas (torchvision behaviour); no-op for sane inputs
        dw = jnp.minimum(d_ref[2:3, :] * s[2] + mu[2], BBOX_XFORM_CLIP)
        dh = jnp.minimum(d_ref[3:4, :] * s[3] + mu[3], BBOX_XFORM_CLIP)
        pcx = dx * w + cx
        pcy = dy * h + cy
        pw = jnp.exp(dw) * w
        ph = jnp.exp(dh) * h
        o_ref[0:1, :] = jnp.clip(pcx - 0.5 * pw, 0.0, max_x)
        o_ref[1:2, :] = jnp.clip(pcy - 0.5 * ph, 0.0, max_y)
        o_ref[2:3, :] = jnp.clip(pcx + 0.5 * pw, 0.0, max_x)
        o_ref[3:4, :] = jnp.clip(pcy + 0.5 * ph, 0.0, max_y)

    out = pl.pallas_call(
        kernel,
        out_shape=jax.ShapeDtypeStruct((4, Mp), jnp.float32),
        grid=(Mp // TL,),
        in_specs=[pl.BlockSpec((4, TL), lambda i: (0, i)),
                  pl.BlockSpec((4, TL), lambda i: (0, i))],
        out_specs=pl.BlockSpec((4, TL), lambda i: (0, i)),
        compiler_params=pltpu.CompilerParams(
            dimension_semantics=("parallel",),
            vmem_limit_bytes=VMEM_LIMIT),
    )(bT, dT)
    return out[:, :M].T


# ----------------------------- RoIAlign (NHWC, direct indexing) -----------------------------
def roi_align_nhwc(feat, rois, out_size, scale):
    """feat: (B,H,W,C) NHWC; rois: (R,5)=[batch_idx,x1,y1,x2,y2]; returns (R,out,out,C).
    TODO(synk): single bilinear sample per bin (torchvision sampling_ratio=0 uses adaptive sampling)
    and the gather stays in XLA; a scalar-prefetch Pallas DMA-gather is the real-scale fix."""
    Bn, H, W, C = feat.shape
    bidx = rois[:, 0].astype(jnp.int32)
    x1 = rois[:, 1] * scale
    y1 = rois[:, 2] * scale
    x2 = rois[:, 3] * scale
    y2 = rois[:, 4] * scale
    bw = jnp.maximum(x2 - x1, 1e-3) / out_size
    bh = jnp.maximum(y2 - y1, 1e-3) / out_size
    grid = jnp.arange(out_size, dtype=jnp.float32) + 0.5
    sx = x1[:, None] + grid[None, :] * bw[:, None]
    sy = y1[:, None] + grid[None, :] * bh[:, None]

    def split(c, size):
        c = jnp.clip(c, 0.0, size - 1.0)
        lo = jnp.floor(c).astype(jnp.int32)
        hi = jnp.minimum(lo + 1, size - 1)
        return lo, hi, c - lo.astype(jnp.float32)

    x_lo, x_hi, fx = split(sx, W)
    y_lo, y_hi, fy = split(sy, H)
    b3 = bidx[:, None, None]

    def gather(yi, xi):
        return feat[b3, yi[:, :, None], xi[:, None, :], :]

    v00 = gather(y_lo, x_lo)
    v01 = gather(y_lo, x_hi)
    v10 = gather(y_hi, x_lo)
    v11 = gather(y_hi, x_hi)
    fx_ = fx[:, None, :, None]
    fy_ = fy[:, :, None, None]
    top = v00 * (1.0 - fx_) + v01 * fx_
    bot = v10 * (1.0 - fx_) + v11 * fx_
    return top * (1.0 - fy_) + bot * fy_


# ----------------------------- anchors -----------------------------
def _make_anchors(Hf, Wf, stride, scales):
    anchors = []
    for h in range(Hf):
        for w_ in range(Wf):
            cx = w_ * stride + (stride - 1) / 2.0
            cy = h * stride + (stride - 1) / 2.0
            for sc in scales:
                size = stride * sc
                half = (size - 1) / 2.0
                anchors.append([cx - half, cy - half, cx + half, cy + half])
    return jnp.asarray(np.asarray(anchors, dtype=np.float32))   # (Hf*Wf*A, 4), (h, w, a) order


# ----------------------------- inference-time parameter prep (outside the jitted hot path) -----------------------------
def prepare_inference_params(params):
    """Fold every weight concat / transpose / lane pad / bf16 cast into constants once."""
    A = NUM_ANCHORS
    p = {}
    # backbone /16 conv as matmul: (DOUT,CIN,3,3) OIHW -> (3,3,CIN,DOUT) -> (9*CIN, DOUTP) bf16
    base_w = jnp.transpose(params["base_w"], (2, 3, 1, 0)).reshape(3 * 3 * CIN, DOUT)
    p["base_w"] = jnp.pad(base_w, ((0, 0), (0, DOUTP - DOUT))).astype(jnp.bfloat16)
    p["base_b"] = jnp.pad(params["base_b"], (0, DOUTP - DOUT)).reshape(1, DOUTP).astype(jnp.float32)
    # RPN 3x3 conv, Cin zero-padded to DOUTP so the lane-padded base feature is consumed directly
    rpn_w = jnp.transpose(params["rpn_conv_w"], (2, 3, 1, 0))             # (3,3,DOUT,RPN_DIM)
    p["rpn_conv_w"] = jnp.pad(rpn_w, ((0, 0), (0, 0), (0, DOUTP - DOUT), (0, 0))).astype(jnp.bfloat16)
    p["rpn_conv_b"] = params["rpn_conv_b"].reshape(1, RPN_DIM).astype(jnp.float32)
    # fused RPN 1x1 head: cls layout is [bg_0..bg_{A-1}, fg_0..fg_{A-1}] (matches view(B,2,-1,W)
    # softmax); fg prob == sigmoid(fg - bg), so the first A columns carry (w_fg - w_bg)
    wc = params["rpn_cls_w"][:, :, 0, 0]                                  # (2A, RPN_DIM)
    wb = params["rpn_bbox_w"][:, :, 0, 0]                                 # (4A, RPN_DIM)
    w_head = jnp.concatenate([(wc[A:2 * A] - wc[:A]).T, wb.T], axis=1)    # (RPN_DIM, 5A)
    b_head = jnp.concatenate([params["rpn_cls_b"][A:2 * A] - params["rpn_cls_b"][:A],
                              params["rpn_bbox_b"]], axis=0)
    p["rpn_head_w"] = jnp.pad(w_head, ((0, 0), (0, HEAD_RPN_P - 5 * A))).astype(jnp.bfloat16)
    p["rpn_head_b"] = jnp.pad(b_head, (0, HEAD_RPN_P - 5 * A)).reshape(1, HEAD_RPN_P).astype(jnp.float32)
    # fc chain + fused RCNN head [cls | bbox] padded to 128 lanes
    p["fc1_w"] = params["fc1_w"].astype(jnp.bfloat16)
    p["fc1_b"] = params["fc1_b"].reshape(1, HIDDEN).astype(jnp.float32)
    p["fc2_w"] = params["fc2_w"].astype(jnp.bfloat16)
    p["fc2_b"] = params["fc2_b"].reshape(1, HIDDEN).astype(jnp.float32)
    wr = jnp.concatenate([params["cls_w"], params["bbox_w"]], axis=1)     # (HIDDEN, 5*n_classes)
    br = jnp.concatenate([params["cls_b"], params["bbox_b"]], axis=0)
    nr = wr.shape[1]
    p["rcnn_head_w"] = jnp.pad(wr, ((0, 0), (0, HEAD_RCNN_P - nr))).astype(jnp.bfloat16)
    p["rcnn_head_b"] = jnp.pad(br, (0, HEAD_RCNN_P - nr)).reshape(1, HEAD_RCNN_P).astype(jnp.float32)
    return p


# ----------------------------- forward (device part jitted, host NMS outside) -----------------------------
def _forward_core(prep, im_data):
    Bn, _, H, W = im_data.shape
    x = jnp.transpose(im_data, (0, 2, 3, 1))                              # single NCHW -> NHWC transpose
    # ---- RCNN_base: /16 strided 3x3 conv + ReLU (synthetic backbone) ----
    # stride >= kernel -> non-overlapping fields: taps are bf16 down-sampling strided slices
    pad, k, s = 1, 3, FEAT_STRIDE
    xb = jnp.pad(x.astype(jnp.bfloat16), ((0, 0), (pad, pad), (pad, pad), (0, 0)))
    Hp, Wp = H + 2 * pad, W + 2 * pad
    Ho = (Hp - k) // s + 1
    Wo = (Wp - k) // s + 1
    taps = [xb[:, i:i + s * (Ho - 1) + 1:s, j:j + s * (Wo - 1) + 1:s, :]
            for i in range(k) for j in range(k)]
    patches = jnp.stack(taps, axis=3).reshape(Bn, Ho * Wo, k * k * CIN)   # bf16, volume <= input
    base_flat = backbone_conv_pallas(patches, prep["base_w"], prep["base_b"])      # (B, Ho*Wo, 128)
    base_feat_p = base_flat.reshape(Bn, Ho, Wo, DOUTP)                    # lane-padded NHWC, kept padded

    # ---- RPN: fused 3x3 conv + ReLU + 1x1 cls/bbox head (one pallas_call, no rpn_feat in HBM) ----
    A = NUM_ANCHORS
    base_pad = jnp.pad(base_feat_p, ((0, 0), (1, 1), (1, 1), (0, 0)))
    head = rpn_fused_pallas(base_pad, prep["rpn_conv_w"], prep["rpn_conv_b"],
                            prep["rpn_head_w"], prep["rpn_head_b"], Ho, Wo, A)     # (B, Ho*Wo, 128)
    fg = head[:, :, :A].reshape(Bn, Ho * Wo * A)                          # (h, w, a) ordering
    deltas = head[:, :, A:5 * A].reshape(Bn * Ho * Wo * A, 4)
    anchors = _make_anchors(Ho, Wo, FEAT_STRIDE, ANCHOR_SCALES)
    K = anchors.shape[0]
    boxes = jnp.broadcast_to(anchors[None], (Bn, K, 4)).reshape(Bn * K, 4)
    props = bbox_decode_pallas(boxes, deltas,
                               stds=(1.0, 1.0, 1.0, 1.0), means=(0.0, 0.0, 0.0, 0.0),
                               clip_hw=(float(H) - 1.0, float(W) - 1.0)).reshape(Bn, K, 4)
    # TODO(synk): RPN proposal NMS omitted; proposals selected by top-k objectness only.
    _, top_idx = jax.lax.top_k(fg, N_ROIS)
    sel = jnp.take_along_axis(props, jnp.broadcast_to(top_idx[:, :, None], (Bn, N_ROIS, 4)), axis=1)
    bidx = jnp.broadcast_to(jnp.arange(Bn, dtype=jnp.float32)[:, None, None], (Bn, N_ROIS, 1))
    rois = jnp.concatenate([bidx, sel], axis=2)                           # (B, N_ROIS, 5)

    # ---- RoIAlign (pooling_mode == 'align') on the unpadded-channel view ----
    pooled = roi_align_nhwc(base_feat_p[..., :DOUT], rois.reshape(-1, 5), POOL, 1.0 / FEAT_STRIDE)
    pooled = pooled.reshape(Bn * N_ROIS, POOL * POOL * DOUT).astype(jnp.bfloat16)

    # ---- _head_to_tail + RCNN_cls_score softmax + RCNN_bbox_pred: one fused pallas_call ----
    out = rcnn_head_fused_pallas(pooled, prep["fc1_w"], prep["fc1_b"],
                                 prep["fc2_w"], prep["fc2_b"],
                                 prep["rcnn_head_w"], prep["rcnn_head_b"], N_ROIS)
    cls_prob = out[:, :N_CLASSES].reshape(Bn, N_ROIS, N_CLASSES)          # F.softmax(cls_score, 1)
    bbox_pred = out[:, N_CLASSES:N_CLASSES + 4 * N_CLASSES].reshape(Bn, N_ROIS, 4 * N_CLASSES)

    # ---- prediction-path decode (bbox_transform_inv + de-normalize + clip) on device ----
    boxes_r = rois[:, :, 1:5]
    boxes_rep = jnp.broadcast_to(boxes_r[:, :, None, :], (Bn, N_ROIS, N_CLASSES, 4)).reshape(-1, 4)
    pred_boxes = bbox_decode_pallas(boxes_rep, bbox_pred.reshape(-1, 4),
                                    stds=BBOX_STDS, means=BBOX_MEANS,
                                    clip_hw=(float(H) - 1.0, float(W) - 1.0))
    pred_boxes = pred_boxes.reshape(Bn, N_ROIS, 4 * N_CLASSES)
    return rois, cls_prob, bbox_pred, pred_boxes


_forward_core_jit = jax.jit(_forward_core)


# ----------------------------- host-side threshold + NMS (data dependent) -----------------------------
def _nms_np(boxes, scores, thresh):
    x1, y1, x2, y2 = boxes[:, 0], boxes[:, 1], boxes[:, 2], boxes[:, 3]
    areas = (x2 - x1 + 1) * (y2 - y1 + 1)
    order = scores.argsort()[::-1]
    keep = []
    while order.size > 0:
        i = order[0]
        keep.append(i)
        xx1 = np.maximum(x1[i], x1[order[1:]])
        yy1 = np.maximum(y1[i], y1[order[1:]])
        xx2 = np.minimum(x2[i], x2[order[1:]])
        yy2 = np.minimum(y2[i], y2[order[1:]])
        w = np.maximum(0.0, xx2 - xx1 + 1)
        h = np.maximum(0.0, yy2 - yy1 + 1)
        inter = w * h
        iou = inter / (areas[i] + areas[order[1:]] - inter)
        order = order[1:][iou <= thresh]
    return np.asarray(keep, dtype=np.int64)


def predict(cls_prob, pred_boxes, im_info):
    # NOTE: like the reference prediction(), the first image's scale (im_info[0][2]) is used for the
    # whole batch; all images share size/scale in this eval path.
    Bn, N, _ = cls_prob.shape
    C = N_CLASSES
    pred_boxes_all = np.asarray(pred_boxes) / float(im_info[0][2])
    scores_np = np.asarray(cls_prob)
    prediction = []
    for i in range(Bn):
        boxes_list, labels_list, scores_list = [], [], []
        for j in range(1, C):
            inds = np.nonzero(scores_np[i, :, j] > THRESH)[0]
            if inds.size > 0:
                cls_scores = scores_np[i, inds, j]
                order = np.argsort(-cls_scores)
                cls_boxes = pred_boxes_all[i, inds][:, j * 4:(j + 1) * 4]
                keep = _nms_np(cls_boxes[order], cls_scores[order], NMS_THRESH)
                cls_boxes = cls_boxes[order][keep]
                cls_scores = cls_scores[order][keep]
                boxes_list += cls_boxes.tolist()
                scores_list += cls_scores.tolist()
                labels_list += [j] * len(cls_boxes)
        prediction.append({"boxes": np.asarray(boxes_list),
                           "labels": np.asarray(labels_list),
                           "scores": np.asarray(scores_list)})
    return prediction


def faster_rcnn_forward(prep, im_data, gt_boxes):
    """Eval-mode forward of _fasterRCNN (training branch / losses not exercised)."""
    Bn, _, H, W = im_data.shape
    im_info = np.asarray([[H, W, 1.0]] * Bn, dtype=np.float32)            # built like the module does
    rois, cls_prob, bbox_pred, pred_boxes = _forward_core_jit(prep, im_data)
    prediction = predict(cls_prob, pred_boxes, im_info)
    return rois, cls_prob, bbox_pred, prediction


# ----------------------------- deterministic parameter init (matches _init_weights stds) -----------------------------
def init_params(key):
    ks = jax.random.split(key, 8)

    def n(k, shape, std):
        return jax.random.normal(k, shape, jnp.float32) * std

    return dict(
        base_w=n(ks[0], (DOUT, CIN, 3, 3), 0.01), base_b=jnp.zeros((DOUT,), jnp.float32),
        rpn_conv_w=n(ks[1], (RPN_DIM, DOUT, 3, 3), 0.01), rpn_conv_b=jnp.zeros((RPN_DIM,), jnp.float32),
        rpn_cls_w=n(ks[2], (2 * NUM_ANCHORS, RPN_DIM, 1, 1), 0.01), rpn_cls_b=jnp.zeros((2 * NUM_ANCHORS,), jnp.float32),
        rpn_bbox_w=n(ks[3], (4 * NUM_ANCHORS, RPN_DIM, 1, 1), 0.01), rpn_bbox_b=jnp.zeros((4 * NUM_ANCHORS,), jnp.float32),
        fc1_w=n(ks[4], (DOUT * POOL * POOL, HIDDEN), 0.01), fc1_b=jnp.zeros((HIDDEN,), jnp.float32),
        fc2_w=n(ks[5], (HIDDEN, HIDDEN), 0.01), fc2_b=jnp.zeros((HIDDEN,), jnp.float32),
        cls_w=n(ks[6], (HIDDEN, N_CLASSES), 0.01), cls_b=jnp.zeros((N_CLASSES,), jnp.float32),
        bbox_w=n(ks[7], (HIDDEN, 4 * N_CLASSES), 0.001), bbox_b=jnp.zeros((4 * N_CLASSES,), jnp.float32),
    )


if __name__ == "__main__":
    key = jax.random.PRNGKey(0)
    kp, kd, kg = jax.random.split(key, 3)
    params = init_params(kp)
    prep = prepare_inference_params(params)                               # one-time, outside the hot path
    im_data = jax.random.normal(kd, (B, CIN, IMG, IMG), jnp.float32)
    gt_boxes = jax.random.uniform(kg, (B, 5, 5), jnp.float32) * IMG       # unused in eval path
    rois, cls_prob, bbox_pred, prediction = faster_rcnn_forward(prep, im_data, gt_boxes)
    jax.block_until_ready((rois, cls_prob, bbox_pred))
    assert rois.shape == (B, N_ROIS, 5)
    assert cls_prob.shape == (B, N_ROIS, N_CLASSES)
    assert bbox_pred.shape == (B, N_ROIS, 4 * N_CLASSES)
    assert len(prediction) == B
    print("KERNEL_OK")
</pallas_src>

<mosaic_0001>
module attributes {stable_mosaic.version = 11 : i64} {
  func.func @kernel(%arg0: i32, %arg1: memref<1x16x36xbf16, #tpu.memory_space<vmem>>, %arg2: memref<36x128xbf16, #tpu.memory_space<vmem>>, %arg3: memref<1x128xf32, #tpu.memory_space<vmem>>, %arg4: memref<1x16x128xf32, #tpu.memory_space<vmem>>) attributes {dimension_semantics = [#tpu.dimension_semantics<parallel>], iteration_bounds = array<i64: 2>, scalar_prefetch = 0 : i64, scratch_operands = 0 : i64, tpu.core_type = #tpu.core_type<tc>, window_params = [{transform_indices = @transform_0, window_bounds = array<i64: 1, 16, 36>}, {pipeline_mode = #tpu.pipeline_mode<synchronous>, transform_indices = @transform_1, window_bounds = array<i64: 36, 128>}, {pipeline_mode = #tpu.pipeline_mode<synchronous>, transform_indices = @transform_2, window_bounds = array<i64: 1, 128>}, {transform_indices = @transform_3, window_bounds = array<i64: 1, 16, 128>}]} {
    %c0 = arith.constant 0 : index
    %c0_0 = arith.constant 0 : index
    %c0_1 = arith.constant 0 : index
    %0 = vector.load %arg1[%c0, %c0_0, %c0_1] : memref<1x16x36xbf16, #tpu.memory_space<vmem>>, vector<1x16x36xbf16>
    %1 = vector.shape_cast %0 : vector<1x16x36xbf16> to vector<16x36xbf16>
    %c0_2 = arith.constant 0 : index
    %c0_3 = arith.constant 0 : index
    %2 = vector.load %arg2[%c0_2, %c0_3] : memref<36x128xbf16, #tpu.memory_space<vmem>>, vector<36x128xbf16>
    %cst = arith.constant dense<0.000000e+00> : vector<16x128xf32>
    %3 = tpu.matmul %1, %2, %cst {dimension_numbers = #tpu.dot_dimension_numbers<[1], [0], [0], [1], [0, 0, 1, 1], [], []>} : vector<16x36xbf16>, vector<36x128xbf16>, vector<16x128xf32> -> vector<16x128xf32>
    %c0_4 = arith.constant 0 : index
    %c0_5 = arith.constant 0 : index
    %4 = vector.load %arg3[%c0_4, %c0_5] : memref<1x128xf32, #tpu.memory_space<vmem>>, vector<1x128xf32>
    %5 = vector.broadcast %4 : vector<1x128xf32> to vector<16x128xf32>
    %6 = arith.addf %3, %5 : vector<16x128xf32>
    %cst_6 = arith.constant 0.000000e+00 : f32
    %7 = vector.broadcast %cst_6 : f32 to vector<16x128xf32>
    %8 = arith.maximumf %6, %7 : vector<16x128xf32>
    %c0_7 = arith.constant 0 : index
    %c0_8 = arith.constant 0 : index
    %c0_9 = arith.constant 0 : index
    %9 = vector.load %arg4[%c0_7, %c0_8, %c0_9] : memref<1x16x128xf32, #tpu.memory_space<vmem>>, vector<1x16x128xf32>
    %10 = vector.shape_cast %9 : vector<1x16x128xf32> to vector<16x128xf32>
    %11 = vector.shape_cast %8 : vector<16x128xf32> to vector<1x16x128xf32>
    tpu.vector_store %arg4[%c0_7, %c0_8, %c0_9], %11 {strides = array<i32>} : memref<1x16x128xf32, #tpu.memory_space<vmem>>, vector<1x16x128xf32>,
    return
  }
  func.func @transform_0(%arg0: i32) -> (i32, i32, i32) {
    %c0_i32 = arith.constant 0 : i32
    %c0_i32_0 = arith.constant 0 : i32
    %c0_i32_1 = arith.constant 0 : i32
    return %arg0, %c0_i32, %c0_i32_0 : i32, i32, i32
  }
  func.func @transform_1(%arg0: i32) -> (i32, i32) {
    %c0_i32 = arith.constant 0 : i32
    %c0_i32_0 = arith.constant 0 : i32
    %c0_i32_1 = arith.constant 0 : i32
    return %c0_i32, %c0_i32_0 : i32, i32
  }
  func.func @transform_2(%arg0: i32) -> (i32, i32) {
    %c0_i32 = arith.constant 0 : i32
    %c0_i32_0 = arith.constant 0 : i32
    %c0_i32_1 = arith.constant 0 : i32
    return %c0_i32, %c0_i32_0 : i32, i32
  }
  func.func @transform_3(%arg0: i32) -> (i32, i32, i32) {
    %c0_i32 = arith.constant 0 : i32
    %c0_i32_0 = arith.constant 0 : i32
    %c0_i32_1 = arith.constant 0 : i32
    return %arg0, %c0_i32, %c0_i32_0 : i32, i32, i32
  }
}

module attributes {stable_mosaic.version = 11 : i64} {
  func.func @kernel(%arg0: i32, %arg1: memref<1x6x6x128xf32, #tpu.memory_space<vmem>>, %arg2: memref<3x3x128x32xbf16, #tpu.memory_space<vmem>>, %arg3: memref<1x32xf32, #tpu.memory_space<vmem>>, %arg4: memref<32x128xbf16, #tpu.memory_space<vmem>>, %arg5: memref<1x128xf32, #tpu.memory_space<vmem>>, %arg6: memref<1x16x128xf32, #tpu.memory_space<vmem>>) attributes {dimension_semantics = [#tpu.dimension_semantics<parallel>], iteration_bounds = array<i64: 2>, scalar_prefetch = 0 : i64, scratch_operands = 0 : i64, tpu.core_type = #tpu.core_type<tc>, window_params = [{transform_indices = @transform_0, window_bounds = array<i64: 1, 6, 6, 128>}, {pipeline_mode = #tpu.pipeline_mode<synchronous>, transform_indices = @transform_1, window_bounds = array<i64: 3, 3, 128, 32>}, {pipeline_mode = #tpu.pipeline_mode<synchronous>, transform_indices = @transform_2, window_bounds = array<i64: 1, 32>}, {pipeline_mode = #tpu.pipeline_mode<synchronous>, transform_indices = @transform_3, window_bounds = array<i64: 32, 128>}, {pipeline_mode = #tpu.pipeline_mode<synchronous>, transform_indices = @transform_4, window_bounds = array<i64: 1, 128>}, {transform_indices = @transform_5, window_bounds = array<i64: 1, 16, 128>}]} {
    %c0 = arith.constant 0 : index
    %c0_0 = arith.constant 0 : index
    %0 = vector.load %arg3[%c0, %c0_0] : memref<1x32xf32, #tpu.memory_space<vmem>>, vector<1x32xf32>
    %1 = vector.shape_cast %0 : vector<1x32xf32> to vector<1x32xf32>
    %2 = vector.broadcast %1 : vector<1x32xf32> to vector<16x32xf32>
    %c0_1 = arith.constant 0 : index
    %c0_2 = arith.constant 0 : index
    %c0_3 = arith.constant 0 : index
    %c0_4 = arith.constant 0 : index
    %3 = vector.load %arg1[%c0_1, %c0_2, %c0_3, %c0_4] : memref<1x6x6x128xf32, #tpu.memory_space<vmem>>, vector<1x4x4x128xf32>
    %4 = vector.shape_cast %3 : vector<1x4x4x128xf32> to vector<4x4x128xf32>
    %5 = vector.shape_cast %4 : vector<4x4x128xf32> to vector<16x128xf32>
    %6 = arith.truncf %5 : vector<16x128xf32> to vector<16x128xbf16>
    %c0_5 = arith.constant 0 : index
    %c0_6 = arith.constant 0 : index
    %c0_7 = arith.constant 0 : index
    %c0_8 = arith.constant 0 : index
    %7 = vector.load %arg2[%c0_5, %c0_6, %c0_7, %c0_8] : memref<3x3x128x32xbf16, #tpu.memory_space<vmem>>, vector<1x1x128x32xbf16>
    %8 = vector.shape_cast %7 : vector<1x1x128x32xbf16> to vector<128x32xbf16>
    %cst = arith.constant dense<0.000000e+00> : vector<16x32xf32>
    %9 = tpu.matmul %6, %8, %cst {dimension_numbers = #tpu.dot_dimension_numbers<[1], [0], [0], [1], [0, 0, 1, 1], [], []>} : vector<16x128xbf16>, vector<128x32xbf16>, vector<16x32xf32> -> vector<16x32xf32>
    %10 = arith.addf %2, %9 : vector<16x32xf32>
    %c0_9 = arith.constant 0 : index
    %c0_10 = arith.constant 0 : index
    %c1 = arith.constant 1 : index
    %c0_11 = arith.constant 0 : index
    %11 = vector.load %arg1[%c0_9, %c0_10, %c1, %c0_11] : memref<1x6x6x128xf32, #tpu.memory_space<vmem>>, vector<1x4x4x128xf32>
    %12 = vector.shape_cast %11 : vector<1x4x4x128xf32> to vector<4x4x128xf32>
    %13 = vector.shape_cast %12 : vector<4x4x128xf32> to vector<16x128xf32>
    %14 = arith.truncf %13 : vector<16x128xf32> to vector<16x128xbf16>
    %c0_12 = arith.constant 0 : index
    %c1_13 = arith.constant 1 : index
    %c0_14 = arith.constant 0 : index
    %c0_15 = arith.constant 0 : index
    %15 = vector.load %arg2[%c0_12, %c1_13, %c0_14, %c0_15] : memref<3x3x128x32xbf16, #tpu.memory_space<vmem>>, vector<1x1x128x32xbf16>
    %16 = vector.shape_cast %15 : vector<1x1x128x32xbf16> to vector<128x32xbf16>
    %cst_16 = arith.constant dense<0.000000e+00> : vector<16x32xf32>
    %17 = tpu.matmul %14, %16, %cst_16 {dimension_numbers = #tpu.dot_dimension_numbers<[1], [0], [0], [1], [0, 0, 1, 1], [], []>} : vector<16x128xbf16>, vector<128x32xbf16>, vector<16x32xf32> -> vector<16x32xf32>
    %18 = arith.addf %10, %17 : vector<16x32xf32>
    %c0_17 = arith.constant 0 : index
    %c0_18 = arith.constant 0 : index
    %c2 = arith.constant 2 : index
    %c0_19 = arith.constant 0 : index
    %19 = vector.load %arg1[%c0_17, %c0_18, %c2, %c0_19] : memref<1x6x6x128xf32, #tpu.memory_space<vmem>>, vector<1x4x4x128xf32>
    %20 = vector.shape_cast %19 : vector<1x4x4x128xf32> to vector<4x4x128xf32>
    %21 = vector.shape_cast %20 : vector<4x4x128xf32> to vector<16x128xf32>
    %22 = arith.truncf %21 : vector<16x128xf32> to vector<16x128xbf16>
    %c0_20 = arith.constant 0 : index
    %c2_21 = arith.constant 2 : index
    %c0_22 = arith.constant 0 : index
    %c0_23 = arith.constant 0 : index
    %23 = vector.load %arg2[%c0_20, %c2_21, %c0_22, %c0_23] : memref<3x3x128x32xbf16, #tpu.memory_space<vmem>>, vector<1x1x128x32xbf16>
    %24 = vector.shape_cast %23 : vector<1x1x128x32xbf16> to vector<128x32xbf16>
    %cst_24 = arith.constant dense<0.000000e+00> : vector<16x32xf32>
    %25 = tpu.matmul %22, %24, %cst_24 {dimension_numbers = #tpu.dot_dimension_numbers<[1], [0], [0], [1], [0, 0, 1, 1], [], []>} : vector<16x128xbf16>, vector<128x32xbf16>, vector<16x32xf32> -> vector<16x32xf32>
    %26 = arith.addf %18, %25 : vector<16x32xf32>
    %c0_25 = arith.constant 0 : index
    %c1_26 = arith.constant 1 : index
    %c0_27 = arith.constant 0 : index
    %c0_28 = arith.constant 0 : index
    %27 = vector.load %arg1[%c0_25, %c1_26, %c0_27, %c0_28] : memref<1x6x6x128xf32, #tpu.memory_space<vmem>>, vector<1x4x4x128xf32>
    %28 = vector.shape_cast %27 : vector<1x4x4x128xf32> to vector<4x4x128xf32>
    %29 = vector.shape_cast %28 : vector<4x4x128xf32> to vector<16x128xf32>
    %30 = arith.truncf %29 : vector<16x128xf32> to vector<16x128xbf16>
    %c1_29 = arith.constant 1 : index
    %c0_30 = arith.constant 0 : index
    %c0_31 = arith.constant 0 : index
    %c0_32 = arith.constant 0 : index
    %31 = vector.load %arg2[%c1_29, %c0_30, %c0_31, %c0_32] : memref<3x3x128x32xbf16, #tpu.memory_space<vmem>>, vector<1x1x128x32xbf16>
    %32 = vector.shape_cast %31 : vector<1x1x128x32xbf16> to vector<128x32xbf16>
    %cst_33 = arith.constant dense<0.000000e+00> : vector<16x32xf32>
    %33 = tpu.matmul %30, %32, %cst_33 {dimension_numbers = #tpu.dot_dimension_numbers<[1], [0], [0], [1], [0, 0, 1, 1], [], []>} : vector<16x128xbf16>, vector<128x32xbf16>, vector<16x32xf32> -> vector<16x32xf32>
    %34 = arith.addf %26, %33 : vector<16x32xf32>
    %c0_34 = arith.constant 0 : index
    %c1_35 = arith.constant 1 : index
    %c1_36 = arith.constant 1 : index
    %c0_37 = arith.constant 0 : index
    %35 = vector.load %arg1[%c0_34, %c1_35, %c1_36, %c0_37] : memref<1x6x6x128xf32, #tpu.memory_space<vmem>>, vector<1x4x4x128xf32>
    %36 = vector.shape_cast %35 : vector<1x4x4x128xf32> to vector<4x4x128xf32>
    %37 = vector.shape_cast %36 : vector<4x4x128xf32> to vector<16x128xf32>
    %38 = arith.truncf %37 : vector<16x128xf32> to vector<16x128xbf16>
    %c1_38 = arith.constant 1 : index
    %c1_39 = arith.constant 1 : index
    %c0_40 = arith.constant 0 : index
    %c0_41 = arith.constant 0 : index
    %39 = vector.load %arg2[%c1_38, %c1_39, %c0_40, %c0_41] : memref<3x3x128x32xbf16, #tpu.memory_space<vmem>>, vector<1x1x128x32xbf16>
    %40 = vector.shape_cast %39 : vector<1x1x128x32xbf16> to vector<128x32xbf16>
    %cst_42 = arith.constant dense<0.000000e+00> : vector<16x32xf32>
    %41 = tpu.matmul %38, %40, %cst_42 {dimension_numbers = #tpu.dot_dimension_numbers<[1], [0], [0], [1], [0, 0, 1, 1], [], []>} : vector<16x128xbf16>, vector<128x32xbf16>, vector<16x32xf32> -> vector<16x32xf32>
    %42 = arith.addf %34, %41 : vector<16x32xf32>
    %c0_43 = arith.constant 0 : index
    %c1_44 = arith.constant 1 : index
    %c2_45 = arith.constant 2 : index
    %c0_46 = arith.constant 0 : index
    %43 = vector.load %arg1[%c0_43, %c1_44, %c2_45, %c0_46] : memref<1x6x6x128xf32, #tpu.memory_space<vmem>>, vector<1x4x4x128xf32>
    %44 = vector.shape_cast %43 : vector<1x4x4x128xf32> to vector<4x4x128xf32>
    %45 = vector.shape_cast %44 : vector<4x4x128xf32> to vector<16x128xf32>
    %46 = arith.truncf %45 : vector<16x128xf32> to vector<16x128xbf16>
    %c1_47 = arith.constant 1 : index
    %c2_48 = arith.constant 2 : index
    %c0_49 = arith.constant 0 : index
    %c0_50 = arith.constant 0 : index
    %47 = vector.load %arg2[%c1_47, %c2_48, %c0_49, %c0_50] : memref<3x3x128x32xbf16, #tpu.memory_space<vmem>>, vector<1x1x128x32xbf16>
    %48 = vector.shape_cast %47 : vector<1x1x128x32xbf16> to vector<128x32xbf16>
    %cst_51 = arith.constant dense<0.000000e+00> : vector<16x32xf32>
    %49 = tpu.matmul %46, %48, %cst_51 {dimension_numbers = #tpu.dot_dimension_numbers<[1], [0], [0], [1], [0, 0, 1, 1], [], []>} : vector<16x128xbf16>, vector<128x32xbf16>, vector<16x32xf32> -> vector<16x32xf32>
    %50 = arith.addf %42, %49 : vector<16x32xf32>
    %c0_52 = arith.constant 0 : index
    %c2_53 = arith.constant 2 : index
    %c0_54 = arith.constant 0 : index
    %c0_55 = arith.constant 0 : index
    %51 = vector.load %arg1[%c0_52, %c2_53, %c0_54, %c0_55] : memref<1x6x6x128xf32, #tpu.memory_space<vmem>>, vector<1x4x4x128xf32>
    %52 = vector.shape_cast %51 : vector<1x4x4x128xf32> to vector<4x4x128xf32>
    %53 = vector.shape_cast %52 : vector<4x4x128xf32> to vector<16x128xf32>
    %54 = arith.truncf %53 : vector<16x128xf32> to vector<16x128xbf16>
    %c2_56 = arith.constant 2 : index
    %c0_57 = arith.constant 0 : index
    %c0_58 = arith.constant 0 : index
    %c0_59 = arith.constant 0 : index
    %55 = vector.load %arg2[%c2_56, %c0_57, %c0_58, %c0_59] : memref<3x3x128x32xbf16, #tpu.memory_space<vmem>>, vector<1x1x128x32xbf16>
    %56 = vector.shape_cast %55 : vector<1x1x128x32xbf16> to vector<128x32xbf16>
    %cst_60 = arith.constant dense<0.000000e+00> : vector<16x32xf32>
    %57 = tpu.matmul %54, %56, %cst_60 {dimension_numbers = #tpu.dot_dimension_numbers<[1], [0], [0], [1], [0, 0, 1, 1], [], []>} : vector<16x128xbf16>, vector<128x32xbf16>, vector<16x32xf32> -> vector<16x32xf32>
    %58 = arith.addf %50, %57 : vector<16x32xf32>
    %c0_61 = arith.constant 0 : index
    %c2_62 = arith.constant 2 : index
    %c1_63 = arith.constant 1 : index
    %c0_64 = arith.constant 0 : index
    %59 = vector.load %arg1[%c0_61, %c2_62, %c1_63, %c0_64] : memref<1x6x6x128xf32, #tpu.memory_space<vmem>>, vector<1x4x4x128xf32>
    %60 = vector.shape_cast %59 : vector<1x4x4x128xf32> to vector<4x4x128xf32>
    %61 = vector.shape_cast %60 : vector<4x4x128xf32> to vector<16x128xf32>
    %62 = arith.truncf %61 : vector<16x128xf32> to vector<16x128xbf16>
    %c2_65 = arith.constant 2 : index
    %c1_66 = arith.constant 1 : index
    %c0_67 = arith.constant 0 : index
    %c0_68 = arith.constant 0 : index
    %63 = vector.load %arg2[%c2_65, %c1_66, %c0_67, %c0_68] : memref<3x3x128x32xbf16, #tpu.memory_space<vmem>>, vector<1x1x128x32xbf16>
    %64 = vector.shape_cast %63 : vector<1x1x128x32xbf16> to vector<128x32xbf16>
    %cst_69 = arith.constant dense<0.000000e+00> : vector<16x32xf32>
    %65 = tpu.matmul %62, %64, %cst_69 {dimension_numbers = #tpu.dot_dimension_numbers<[1], [0], [0], [1], [0, 0, 1, 1], [], []>} : vector<16x128xbf16>, vector<128x32xbf16>, vector<16x32xf32> -> vector<16x32xf32>
    %66 = arith.addf %58, %65 : vector<16x32xf32>
    %c0_70 = arith.constant 0 : index
    %c2_71 = arith.constant 2 : index
    %c2_72 = arith.constant 2 : index
    %c0_73 = arith.constant 0 : index
    %67 = vector.load %arg1[%c0_70, %c2_71, %c2_72, %c0_73] : memref<1x6x6x128xf32, #tpu.memory_space<vmem>>, vector<1x4x4x128xf32>
    %68 = vector.shape_cast %67 : vector<1x4x4x128xf32> to vector<4x4x128xf32>
    %69 = vector.shape_cast %68 : vector<4x4x128xf32> to vector<16x128xf32>
    %70 = arith.truncf %69 : vector<16x128xf32> to vector<16x128xbf16>
    %c2_74 = arith.constant 2 : index
    %c2_75 = arith.constant 2 : index
    %c0_76 = arith.constant 0 : index
    %c0_77 = arith.constant 0 : index
    %71 = vector.load %arg2[%c2_74, %c2_75, %c0_76, %c0_77] : memref<3x3x128x32xbf16, #tpu.memory_space<vmem>>, vector<1x1x128x32xbf16>
    %72 = vector.shape_cast %71 : vector<1x1x128x32xbf16> to vector<128x32xbf16>
    %cst_78 = arith.constant dense<0.000000e+00> : vector<16x32xf32>
    %73 = tpu.matmul %70, %72, %cst_78 {dimension_numbers = #tpu.dot_dimension_numbers<[1], [0], [0], [1], [0, 0, 1, 1], [], []>} : vector<16x128xbf16>, vector<128x32xbf16>, vector<16x32xf32> -> vector<16x32xf32>
    %74 = arith.addf %66, %73 : vector<16x32xf32>
    %cst_79 = arith.constant 0.000000e+00 : f32
    %75 = vector.broadcast %cst_79 : f32 to vector<16x32xf32>
    %76 = arith.maximumf %74, %75 : vector<16x32xf32>
    %77 = arith.truncf %76 : vector<16x32xf32> to vector<16x32xbf16>
    %c0_80 = arith.constant 0 : index
    %c0_81 = arith.constant 0 : index
    %78 = vector.load %arg4[%c0_80, %c0_81] : memref<32x128xbf16, #tpu.memory_space<vmem>>, vector<32x128xbf16>
    %cst_82 = arith.constant dense<0.000000e+00> : vector<16x128xf32>
    %79 = tpu.matmul %77, %78, %cst_82 {dimension_numbers = #tpu.dot_dimension_numbers<[1], [0], [0], [1], [0, 0, 1, 1], [], []>} : vector<16x32xbf16>, vector<32x128xbf16>, vector<16x128xf32> -> vector<16x128xf32>
    %c0_83 = arith.constant 0 : index
    %c0_84 = arith.constant 0 : index
    %80 = vector.load %arg5[%c0_83, %c0_84] : memref<1x128xf32, #tpu.memory_space<vmem>>, vector<1x128xf32>
    %81 = vector.broadcast %80 : vector<1x128xf32> to vector<16x128xf32>
    %82 = arith.addf %79, %81 : vector<16x128xf32>
    %83 = tpu.iota {dimensions = array<i32: 1>} : vector<16x128xi32>
    %cst_85 = arith.constant 0.000000e+00 : f32
    %84 = vector.broadcast %cst_85 : f32 to vector<16x128xf32>
    %85 = arith.subf %84, %82 : vector<16x128xf32>
    %86 = math.exp %85 : vector<16x128xf32>
    %cst_86 = arith.constant 1.000000e+00 : f32
    %87 = vector.broadcast %cst_86 : f32 to vector<16x128xf32>
    %88 = arith.addf %87, %86 : vector<16x128xf32>
    %cst_87 = arith.constant 1.000000e+00 : f32
    %89 = vector.broadcast %cst_87 : f32 to vector<16x128xf32>
    %90 = arith.divf %89, %88 : vector<16x128xf32>
    %c3_i32 = arith.constant 3 : i32
    %91 = vector.broadcast %c3_i32 : i32 to vector<16x128xi32>
    %92 = arith.cmpi slt, %83, %91 : vector<16x128xi32>
    %93 = arith.select %92, %90, %82 : vector<16x128xi1>, vector<16x128xf32>
    %c0_88 = arith.constant 0 : index
    %c0_89 = arith.constant 0 : index
    %c0_90 = arith.constant 0 : index
    %94 = vector.load %arg6[%c0_88, %c0_89, %c0_90] : memref<1x16x128xf32, #tpu.memory_space<vmem>>, vector<1x16x128xf32>
    %95 = vector.shape_cast %94 : vector<1x16x128xf32> to vector<16x128xf32>
    %96 = vector.shape_cast %93 : vector<16x128xf32> to vector<1x16x128xf32>
    tpu.vector_store %arg6[%c0_88, %c0_89, %c0_90], %96 {strides = array<i32>} : memref<1x16x128xf32, #tpu.memory_space<vmem>>, vector<1x16x128xf32>,
    return
  }
  func.func @transform_0(%arg0: i32) -> (i32, i32, i32, i32) {
    %c0_i32 = arith.constant 0 : i32
    %c0_i32_0 = arith.constant 0 : i32
    %c0_i32_1 = arith.constant 0 : i32
    %c0_i32_2 = arith.constant 0 : i32
    return %arg0, %c0_i32, %c0_i32_0, %c0_i32_1 : i32, i32, i32, i32
  }
  func.func @transform_1(%arg0: i32) -> (i32, i32, i32, i32) {
    %c0_i32 = arith.constant 0 : i32
    %c0_i32_0 = arith.constant 0 : i32
    %c0_i32_1 = arith.constant 0 : i32
    %c0_i32_2 = arith.constant 0 : i32
    %c0_i32_3 = arith.constant 0 : i32
    return %c0_i32, %c0_i32_0, %c0_i32_1, %c0_i32_2 : i32, i32, i32, i32
  }
  func.func @transform_2(%arg0: i32) -> (i32, i32) {
    %c0_i32 = arith.constant 0 : i32
    %c0_i32_0 = arith.constant 0 : i32
    %c0_i32_1 = arith.constant 0 : i32
    return %c0_i32, %c0_i32_0 : i32, i32
  }
  func.func @transform_3(%arg0: i32) -> (i32, i32) {
    %c0_i32 = arith.constant 0 : i32
    %c0_i32_0 = arith.constant 0 : i32
    %c0_i32_1 = arith.constant 0 : i32
    return %c0_i32, %c0_i32_0 : i32, i32
  }
  func.func @transform_4(%arg0: i32) -> (i32, i32) {
    %c0_i32 = arith.constant 0 : i32
    %c0_i32_0 = arith.constant 0 : i32
    %c0_i32_1 = arith.constant 0 : i32
    return %c0_i32, %c0_i32_0 : i32, i32
  }
  func.func @transform_5(%arg0: i32) -> (i32, i32, i32) {
    %c0_i32 = arith.constant 0 : i32
    %c0_i32_0 = arith.constant 0 : i32
    %c0_i32_1 = arith.constant 0 : i32
    return %arg0, %c0_i32, %c0_i32_0 : i32, i32, i32
  }
}

module attributes {stable_mosaic.version = 11 : i64} {
  func.func @kernel(%arg0: i32, %arg1: memref<4x128xf32, #tpu.memory_space<vmem>>, %arg2: memref<4x128xf32, #tpu.memory_space<vmem>>, %arg3: memref<4x128xf32, #tpu.memory_space<vmem>>) attributes {dimension_semantics = [#tpu.dimension_semantics<parallel>], iteration_bounds = array<i64: 1>, scalar_prefetch = 0 : i64, scratch_operands = 0 : i64, tpu.core_type = #tpu.core_type<tc>, window_params = [{transform_indices = @transform_0, window_bounds = array<i64: 4, 128>}, {transform_indices = @transform_1, window_bounds = array<i64: 4, 128>}, {transform_indices = @transform_2, window_bounds = array<i64: 4, 128>}]} {
    %c0 = arith.constant 0 : index
    %c0_0 = arith.constant 0 : index
    %0 = vector.load %arg1[%c0, %c0_0] : memref<4x128xf32, #tpu.memory_space<vmem>>, vector<1x128xf32>
    %c1 = arith.constant 1 : index
    %c0_1 = arith.constant 0 : index
    %1 = vector.load %arg1[%c1, %c0_1] : memref<4x128xf32, #tpu.memory_space<vmem>>, vector<1x128xf32>
    %c2 = arith.constant 2 : index
    %c0_2 = arith.constant 0 : index
    %2 = vector.load %arg1[%c2, %c0_2] : memref<4x128xf32, #tpu.memory_space<vmem>>, vector<1x128xf32>
    %c3 = arith.constant 3 : index
    %c0_3 = arith.constant 0 : index
    %3 = vector.load %arg1[%c3, %c0_3] : memref<4x128xf32, #tpu.memory_space<vmem>>, vector<1x128xf32>
    %4 = arith.subf %2, %0 : vector<1x128xf32>
    %cst = arith.constant 1.000000e+00 : f32
    %5 = vector.broadcast %cst : f32 to vector<1x128xf32>
    %6 = arith.addf %4, %5 : vector<1x128xf32>
    %7 = arith.subf %3, %1 : vector<1x128xf32>
    %cst_4 = arith.constant 1.000000e+00 : f32
    %8 = vector.broadcast %cst_4 : f32 to vector<1x128xf32>
    %9 = arith.addf %7, %8 : vector<1x128xf32>
    %cst_5 = arith.constant 5.000000e-01 : f32
    %10 = vector.broadcast %cst_5 : f32 to vector<1x128xf32>
    %11 = arith.mulf %10, %6 : vector<1x128xf32>
    %12 = arith.addf %0, %11 : vector<1x128xf32>
    %cst_6 = arith.constant 5.000000e-01 : f32
    %13 = vector.broadcast %cst_6 : f32 to vector<1x128xf32>
    %14 = arith.mulf %13, %9 : vector<1x128xf32>
    %15 = arith.addf %1, %14 : vector<1x128xf32>
    %c0_7 = arith.constant 0 : index
    %c0_8 = arith.constant 0 : index
    %16 = vector.load %arg2[%c0_7, %c0_8] : memref<4x128xf32, #tpu.memory_space<vmem>>, vector<1x128xf32>
    %cst_9 = arith.constant 1.000000e+00 : f32
    %17 = vector.broadcast %cst_9 : f32 to vector<1x128xf32>
    %18 = arith.mulf %16, %17 : vector<1x128xf32>
    %cst_10 = arith.constant 0.000000e+00 : f32
    %19 = vector.broadcast %cst_10 : f32 to vector<1x128xf32>
    %20 = arith.addf %18, %19 : vector<1x128xf32>
    %c1_11 = arith.constant 1 : index
    %c0_12 = arith.constant 0 : index
    %21 = vector.load %arg2[%c1_11, %c0_12] : memref<4x128xf32, #tpu.memory_space<vmem>>, vector<1x128xf32>
    %cst_13 = arith.constant 1.000000e+00 : f32
    %22 = vector.broadcast %cst_13 : f32 to vector<1x128xf32>
    %23 = arith.mulf %21, %22 : vector<1x128xf32>
    %cst_14 = arith.constant 0.000000e+00 : f32
    %24 = vector.broadcast %cst_14 : f32 to vector<1x128xf32>
    %25 = arith.addf %23, %24 : vector<1x128xf32>
    %c2_15 = arith.constant 2 : index
    %c0_16 = arith.constant 0 : index
    %26 = vector.load %arg2[%c2_15, %c0_16] : memref<4x128xf32, #tpu.memory_space<vmem>>, vector<1x128xf32>
    %cst_17 = arith.constant 1.000000e+00 : f32
    %27 = vector.broadcast %cst_17 : f32 to vector<1x128xf32>
    %28 = arith.mulf %26, %27 : vector<1x128xf32>
    %cst_18 = arith.constant 0.000000e+00 : f32
    %29 = vector.broadcast %cst_18 : f32 to vector<1x128xf32>
    %30 = arith.addf %28, %29 : vector<1x128xf32>
    %cst_19 = arith.constant 4.13516665 : f32
    %31 = vector.broadcast %cst_19 : f32 to vector<1x128xf32>
    %32 = arith.minimumf %30, %31 : vector<1x128xf32>
    %c3_20 = arith.constant 3 : index
    %c0_21 = arith.constant 0 : index
    %33 = vector.load %arg2[%c3_20, %c0_21] : memref<4x128xf32, #tpu.memory_space<vmem>>, vector<1x128xf32>
    %cst_22 = arith.constant 1.000000e+00 : f32
    %34 = vector.broadcast %cst_22 : f32 to vector<1x128xf32>
    %35 = arith.mulf %33, %34 : vector<1x128xf32>
    %cst_23 = arith.constant 0.000000e+00 : f32
    %36 = vector.broadcast %cst_23 : f32 to vector<1x128xf32>
    %37 = arith.addf %35, %36 : vector<1x128xf32>
    %cst_24 = arith.constant 4.13516665 : f32
    %38 = vector.broadcast %cst_24 : f32 to vector<1x128xf32>
    %39 = arith.minimumf %37, %38 : vector<1x128xf32>
    %40 = arith.mulf %20, %6 : vector<1x128xf32>
    %41 = arith.addf %40, %12 : vector<1x128xf32>
    %42 = arith.mulf %25, %9 : vector<1x128xf32>
    %43 = arith.addf %42, %15 : vector<1x128xf32>
    %44 = math.exp %32 : vector<1x128xf32>
    %45 = arith.mulf %44, %6 : vector<1x128xf32>
    %46 = math.exp %39 : vector<1x128xf32>
    %47 = arith.mulf %46, %9 : vector<1x128xf32>
    %cst_25 = arith.constant 5.000000e-01 : f32
    %48 = vector.broadcast %cst_25 : f32 to vector<1x128xf32>
    %49 = arith.mulf %48, %45 : vector<1x128xf32>
    %50 = arith.subf %41, %49 : vector<1x128xf32>
    %cst_26 = arith.constant 0.000000e+00 : f32
    %cst_27 = arith.constant 6.300000e+01 : f32
    %51 = vector.broadcast %cst_26 : f32 to vector<1x128xf32>
    %52 = arith.maximumf %51, %50 : vector<1x128xf32>
    %53 = vector.broadcast %cst_27 : f32 to vector<1x128xf32>
    %54 = arith.minimumf %53, %52 : vector<1x128xf32>
    %c0_28 = arith.constant 0 : index
    %c0_29 = arith.constant 0 : index
    %55 = vector.load %arg3[%c0_28, %c0_29] : memref<4x128xf32, #tpu.memory_space<vmem>>, vector<1x128xf32>
    tpu.vector_store %arg3[%c0_28, %c0_29], %54 {strides = array<i32>} : memref<4x128xf32, #tpu.memory_space<vmem>>, vector<1x128xf32>,
    %cst_30 = arith.constant 5.000000e-01 : f32
    %56 = vector.broadcast %cst_30 : f32 to vector<1x128xf32>
    %57 = arith.mulf %56, %47 : vector<1x128xf32>
    %58 = arith.subf %43, %57 : vector<1x128xf32>
    %cst_31 = arith.constant 0.000000e+00 : f32
    %cst_32 = arith.constant 6.300000e+01 : f32
    %59 = vector.broadcast %cst_31 : f32 to vector<1x128xf32>
    %60 = arith.maximumf %59, %58 : vector<1x128xf32>
    %61 = vector.broadcast %cst_32 : f32 to vector<1x128xf32>
    %62 = arith.minimumf %61, %60 : vector<1x128xf32>
    %c1_33 = arith.constant 1 : index
    %c0_34 = arith.constant 0 : index
    %63 = vector.load %arg3[%c1_33, %c0_34] : memref<4x128xf32, #tpu.memory_space<vmem>>, vector<1x128xf32>
    tpu.vector_store %arg3[%c1_33, %c0_34], %62 {strides = array<i32>} : memref<4x128xf32, #tpu.memory_space<vmem>>, vector<1x128xf32>,
    %cst_35 = arith.constant 5.000000e-01 : f32
    %64 = vector.broadcast %cst_35 : f32 to vector<1x128xf32>
    %65 = arith.mulf %64, %45 : vector<1x128xf32>
    %66 = arith.addf %41, %65 : vector<1x128xf32>
    %cst_36 = arith.constant 0.000000e+00 : f32
    %cst_37 = arith.constant 6.300000e+01 : f32
    %67 = vector.broadcast %cst_36 : f32 to vector<1x128xf32>
    %68 = arith.maximumf %67, %66 : vector<1x128xf32>
    %69 = vector.broadcast %cst_37 : f32 to vector<1x128xf32>
    %70 = arith.minimumf %69, %68 : vector<1x128xf32>
    %c2_38 = arith.constant 2 : index
    %c0_39 = arith.constant 0 : index
    %71 = vector.load %arg3[%c2_38, %c0_39] : memref<4x128xf32, #tpu.memory_space<vmem>>, vector<1x128xf32>
    tpu.vector_store %arg3[%c2_38, %c0_39], %70 {strides = array<i32>} : memref<4x128xf32, #tpu.memory_space<vmem>>, vector<1x128xf32>,
    %cst_40 = arith.constant 5.000000e-01 : f32
    %72 = vector.broadcast %cst_40 : f32 to vector<1x128xf32>
    %73 = arith.mulf %72, %47 : vector<1x128xf32>
    %74 = arith.addf %43, %73 : vector<1x128xf32>
    %cst_41 = arith.constant 0.000000e+00 : f32
    %cst_42 = arith.constant 6.300000e+01 : f32
    %75 = vector.broadcast %cst_41 : f32 to vector<1x128xf32>
    %76 = arith.maximumf %75, %74 : vector<1x128xf32>
    %77 = vector.broadcast %cst_42 : f32 to vector<1x128xf32>
    %78 = arith.minimumf %77, %76 : vector<1x128xf32>
    %c3_43 = arith.constant 3 : index
    %c0_44 = arith.constant 0 : index
    %79 = vector.load %arg3[%c3_43, %c0_44] : memref<4x128xf32, #tpu.memory_space<vmem>>, vector<1x128xf32>
    tpu.vector_store %arg3[%c3_43, %c0_44], %78 {strides = array<i32>} : memref<4x128xf32, #tpu.memory_space<vmem>>, vector<1x128xf32>,
    return
  }
  func.func @transform_0(%arg0: i32) -> (i32, i32) {
    %c0_i32 = arith.constant 0 : i32
    %c0_i32_0 = arith.constant 0 : i32
    return %c0_i32, %arg0 : i32, i32
  }
  func.func @transform_1(%arg0: i32) -> (i32, i32) {
    %c0_i32 = arith.constant 0 : i32
    %c0_i32_0 = arith.constant 0 : i32
    return %c0_i32, %arg0 : i32, i32
  }
  func.func @transform_2(%arg0: i32) -> (i32, i32) {
    %c0_i32 = arith.constant 0 : i32
    %c0_i32_0 = arith.constant 0 : i32
    return %c0_i32, %arg0 : i32, i32
  }
}

module attributes {stable_mosaic.version = 11 : i64} {
  func.func @kernel(%arg0: i32, %arg1: memref<8x512xbf16, #tpu.memory_space<vmem>>, %arg2: memref<512x64xbf16, #tpu.memory_space<vmem>>, %arg3: memref<1x64xf32, #tpu.memory_space<vmem>>, %arg4: memref<64x64xbf16, #tpu.memory_space<vmem>>, %arg5: memref<1x64xf32, #tpu.memory_space<vmem>>, %arg6: memref<64x128xbf16, #tpu.memory_space<vmem>>, %arg7: memref<1x128xf32, #tpu.memory_space<vmem>>, %arg8: memref<8x128xf32, #tpu.memory_space<vmem>>) attributes {dimension_semantics = [#tpu.dimension_semantics<parallel>], iteration_bounds = array<i64: 2>, scalar_prefetch = 0 : i64, scratch_operands = 0 : i64, tpu.core_type = #tpu.core_type<tc>, window_params = [{transform_indices = @transform_0, window_bounds = array<i64: 8, 512>}, {pipeline_mode = #tpu.pipeline_mode<synchronous>, transform_indices = @transform_1, window_bounds = array<i64: 512, 64>}, {pipeline_mode = #tpu.pipeline_mode<synchronous>, transform_indices = @transform_2, window_bounds = array<i64: 1, 64>}, {pipeline_mode = #tpu.pipeline_mode<synchronous>, transform_indices = @transform_3, window_bounds = array<i64: 64, 64>}, {pipeline_mode = #tpu.pipeline_mode<synchronous>, transform_indices = @transform_4, window_bounds = array<i64: 1, 64>}, {pipeline_mode = #tpu.pipeline_mode<synchronous>, transform_indices = @transform_5, window_bounds = array<i64: 64, 128>}, {pipeline_mode = #tpu.pipeline_mode<synchronous>, transform_indices = @transform_6, window_bounds = array<i64: 1, 128>}, {transform_indices = @transform_7, window_bounds = array<i64: 8, 128>}]} {
    %c0 = arith.constant 0 : index
    %c0_0 = arith.constant 0 : index
    %0 = vector.load %arg1[%c0, %c0_0] : memref<8x512xbf16, #tpu.memory_space<vmem>>, vector<8x512xbf16>
    %c0_1 = arith.constant 0 : index
    %c0_2 = arith.constant 0 : index
    %1 = vector.load %arg2[%c0_1, %c0_2] : memref<512x64xbf16, #tpu.memory_space<vmem>>, vector<512x64xbf16>
    %cst = arith.constant dense<0.000000e+00> : vector<8x64xf32>
    %2 = tpu.matmul %0, %1, %cst {dimension_numbers = #tpu.dot_dimension_numbers<[1], [0], [0], [1], [0, 0, 1, 1], [], []>} : vector<8x512xbf16>, vector<512x64xbf16>, vector<8x64xf32> -> vector<8x64xf32>
    %c0_3 = arith.constant 0 : index
    %c0_4 = arith.constant 0 : index
    %3 = vector.load %arg3[%c0_3, %c0_4] : memref<1x64xf32, #tpu.memory_space<vmem>>, vector<1x64xf32>
    %4 = vector.broadcast %3 : vector<1x64xf32> to vector<8x64xf32>
    %5 = arith.addf %2, %4 : vector<8x64xf32>
    %cst_5 = arith.constant 0.000000e+00 : f32
    %6 = vector.broadcast %cst_5 : f32 to vector<8x64xf32>
    %7 = arith.maximumf %5, %6 : vector<8x64xf32>
    %8 = arith.truncf %7 : vector<8x64xf32> to vector<8x64xbf16>
    %c0_6 = arith.constant 0 : index
    %c0_7 = arith.constant 0 : index
    %9 = vector.load %arg4[%c0_6, %c0_7] : memref<64x64xbf16, #tpu.memory_space<vmem>>, vector<64x64xbf16>
    %cst_8 = arith.constant dense<0.000000e+00> : vector<8x64xf32>
    %10 = tpu.matmul %8, %9, %cst_8 {dimension_numbers = #tpu.dot_dimension_numbers<[1], [0], [0], [1], [0, 0, 1, 1], [], []>} : vector<8x64xbf16>, vector<64x64xbf16>, vector<8x64xf32> -> vector<8x64xf32>
    %c0_9 = arith.constant 0 : index
    %c0_10 = arith.constant 0 : index
    %11 = vector.load %arg5[%c0_9, %c0_10] : memref<1x64xf32, #tpu.memory_space<vmem>>, vector<1x64xf32>
    %12 = vector.broadcast %11 : vector<1x64xf32> to vector<8x64xf32>
    %13 = arith.addf %10, %12 : vector<8x64xf32>
    %cst_11 = arith.constant 0.000000e+00 : f32
    %14 = vector.broadcast %cst_11 : f32 to vector<8x64xf32>
    %15 = arith.maximumf %13, %14 : vector<8x64xf32>
    %16 = arith.truncf %15 : vector<8x64xf32> to vector<8x64xbf16>
    %c0_12 = arith.constant 0 : index
    %c0_13 = arith.constant 0 : index
    %17 = vector.load %arg6[%c0_12, %c0_13] : memref<64x128xbf16, #tpu.memory_space<vmem>>, vector<64x128xbf16>
    %cst_14 = arith.constant dense<0.000000e+00> : vector<8x128xf32>
    %18 = tpu.matmul %16, %17, %cst_14 {dimension_numbers = #tpu.dot_dimension_numbers<[1], [0], [0], [1], [0, 0, 1, 1], [], []>} : vector<8x64xbf16>, vector<64x128xbf16>, vector<8x128xf32> -> vector<8x128xf32>
    %c0_15 = arith.constant 0 : index
    %c0_16 = arith.constant 0 : index
    %19 = vector.load %arg7[%c0_15, %c0_16] : memref<1x128xf32, #tpu.memory_space<vmem>>, vector<1x128xf32>
    %20 = vector.broadcast %19 : vector<1x128xf32> to vector<8x128xf32>
    %21 = arith.addf %18, %20 : vector<8x128xf32>
    %22 = tpu.iota {dimensions = array<i32: 1>} : vector<8x128xi32>
    %c4_i32 = arith.constant 4 : i32
    %23 = vector.broadcast %c4_i32 : i32 to vector<8x128xi32>
    %24 = arith.cmpi slt, %22, %23 : vector<8x128xi32>
    %cst_17 = arith.constant -1.000000e+30 : f32
    %25 = vector.broadcast %cst_17 : f32 to vector<8x128xf32>
    %26 = arith.select %24, %21, %25 : vector<8x128xi1>, vector<8x128xf32>
    %cst_18 = arith.constant dense<0xFF800000> : vector<8xf32>
    %27 = vector.multi_reduction <maximumf>, %26, %cst_18 [1] : vector<8x128xf32> to vector<8xf32>
    %28 = vector.shape_cast %27 : vector<8xf32> to vector<8x1xf32>
    %29 = vector.broadcast %28 : vector<8x1xf32> to vector<8x128xf32>
    %30 = arith.subf %26, %29 : vector<8x128xf32>
    %31 = math.exp %30 : vector<8x128xf32>
    %cst_19 = arith.constant 0.000000e+00 : f32
    %32 = vector.broadcast %cst_19 : f32 to vector<8x128xf32>
    %33 = arith.select %24, %31, %32 : vector<8x128xi1>, vector<8x128xf32>
    %cst_20 = arith.constant dense<0.000000e+00> : vector<8xf32>
    %34 = vector.multi_reduction <add>, %33, %cst_20 [1] : vector<8x128xf32> to vector<8xf32>
    %35 = vector.shape_cast %34 : vector<8xf32> to vector<8x1xf32>
    %36 = vector.broadcast %35 : vector<8x1xf32> to vector<8x128xf32>
    %37 = arith.divf %33, %36 : vector<8x128xf32>
    %38 = arith.select %24, %37, %21 : vector<8x128xi1>, vector<8x128xf32>
    %c0_21 = arith.constant 0 : index
    %c0_22 = arith.constant 0 : index
    %39 = vector.load %arg8[%c0_21, %c0_22] : memref<8x128xf32, #tpu.memory_space<vmem>>, vector<8x128xf32>
    tpu.vector_store %arg8[%c0_21, %c0_22], %38 {strides = array<i32>} : memref<8x128xf32, #tpu.memory_space<vmem>>, vector<8x128xf32>,
    return
  }
  func.func @transform_0(%arg0: i32) -> (i32, i32) {
    %c0_i32 = arith.constant 0 : i32
    %c0_i32_0 = arith.constant 0 : i32
    return %arg0, %c0_i32 : i32, i32
  }
  func.func @transform_1(%arg0: i32) -> (i32, i32) {
    %c0_i32 = arith.constant 0 : i32
    %c0_i32_0 = arith.constant 0 : i32
    %c0_i32_1 = arith.constant 0 : i32
    return %c0_i32, %c0_i32_0 : i32, i32
  }
  func.func @transform_2(%arg0: i32) -> (i32, i32) {
    %c0_i32 = arith.constant 0 : i32
    %c0_i32_0 = arith.constant 0 : i32
    %c0_i32_1 = arith.constant 0 : i32
    return %c0_i32, %c0_i32_0 : i32, i32
  }
  func.func @transform_3(%arg0: i32) -> (i32, i32) {
    %c0_i32 = arith.constant 0 : i32
    %c0_i32_0 = arith.constant 0 : i32
    %c0_i32_1 = arith.constant 0 : i32
    return %c0_i32, %c0_i32_0 : i32, i32
  }
  func.func @transform_4(%arg0: i32) -> (i32, i32) {
    %c0_i32 = arith.constant 0 : i32
    %c0_i32_0 = arith.constant 0 : i32
    %c0_i32_1 = arith.constant 0 : i32
    return %c0_i32, %c0_i32_0 : i32, i32
  }
  func.func @transform_5(%arg0: i32) -> (i32, i32) {
    %c0_i32 = arith.constant 0 : i32
    %c0_i32_0 = arith.constant 0 : i32
    %c0_i32_1 = arith.constant 0 : i32
    return %c0_i32, %c0_i32_0 : i32, i32
  }
  func.func @transform_6(%arg0: i32) -> (i32, i32) {
    %c0_i32 = arith.constant 0 : i32
    %c0_i32_0 = arith.constant 0 : i32
    %c0_i32_1 = arith.constant 0 : i32
    return %c0_i32, %c0_i32_0 : i32, i32
  }
  func.func @transform_7(%arg0: i32) -> (i32, i32) {
    %c0_i32 = arith.constant 0 : i32
    %c0_i32_0 = arith.constant 0 : i32
    return %arg0, %c0_i32 : i32, i32
  }
}

module attributes {stable_mosaic.version = 11 : i64} {
  func.func @kernel(%arg0: i32, %arg1: memref<4x128xf32, #tpu.memory_space<vmem>>, %arg2: memref<4x128xf32, #tpu.memory_space<vmem>>, %arg3: memref<4x128xf32, #tpu.memory_space<vmem>>) attributes {dimension_semantics = [#tpu.dimension_semantics<parallel>], iteration_bounds = array<i64: 1>, scalar_prefetch = 0 : i64, scratch_operands = 0 : i64, tpu.core_type = #tpu.core_type<tc>, window_params = [{transform_indices = @transform_0, window_bounds = array<i64: 4, 128>}, {transform_indices = @transform_1, window_bounds = array<i64: 4, 128>}, {transform_indices = @transform_2, window_bounds = array<i64: 4, 128>}]} {
    %c0 = arith.constant 0 : index
    %c0_0 = arith.constant 0 : index
    %0 = vector.load %arg1[%c0, %c0_0] : memref<4x128xf32, #tpu.memory_space<vmem>>, vector<1x128xf32>
    %c1 = arith.constant 1 : index
    %c0_1 = arith.constant 0 : index
    %1 = vector.load %arg1[%c1, %c0_1] : memref<4x128xf32, #tpu.memory_space<vmem>>, vector<1x128xf32>
    %c2 = arith.constant 2 : index
    %c0_2 = arith.constant 0 : index
    %2 = vector.load %arg1[%c2, %c0_2] : memref<4x128xf32, #tpu.memory_space<vmem>>, vector<1x128xf32>
    %c3 = arith.constant 3 : index
    %c0_3 = arith.constant 0 : index
    %3 = vector.load %arg1[%c3, %c0_3] : memref<4x128xf32, #tpu.memory_space<vmem>>, vector<1x128xf32>
    %4 = arith.subf %2, %0 : vector<1x128xf32>
    %cst = arith.constant 1.000000e+00 : f32
    %5 = vector.broadcast %cst : f32 to vector<1x128xf32>
    %6 = arith.addf %4, %5 : vector<1x128xf32>
    %7 = arith.subf %3, %1 : vector<1x128xf32>
    %cst_4 = arith.constant 1.000000e+00 : f32
    %8 = vector.broadcast %cst_4 : f32 to vector<1x128xf32>
    %9 = arith.addf %7, %8 : vector<1x128xf32>
    %cst_5 = arith.constant 5.000000e-01 : f32
    %10 = vector.broadcast %cst_5 : f32 to vector<1x128xf32>
    %11 = arith.mulf %10, %6 : vector<1x128xf32>
    %12 = arith.addf %0, %11 : vector<1x128xf32>
    %cst_6 = arith.constant 5.000000e-01 : f32
    %13 = vector.broadcast %cst_6 : f32 to vector<1x128xf32>
    %14 = arith.mulf %13, %9 : vector<1x128xf32>
    %15 = arith.addf %1, %14 : vector<1x128xf32>
    %c0_7 = arith.constant 0 : index
    %c0_8 = arith.constant 0 : index
    %16 = vector.load %arg2[%c0_7, %c0_8] : memref<4x128xf32, #tpu.memory_space<vmem>>, vector<1x128xf32>
    %cst_9 = arith.constant 1.000000e-01 : f32
    %17 = vector.broadcast %cst_9 : f32 to vector<1x128xf32>
    %18 = arith.mulf %16, %17 : vector<1x128xf32>
    %cst_10 = arith.constant 0.000000e+00 : f32
    %19 = vector.broadcast %cst_10 : f32 to vector<1x128xf32>
    %20 = arith.addf %18, %19 : vector<1x128xf32>
    %c1_11 = arith.constant 1 : index
    %c0_12 = arith.constant 0 : index
    %21 = vector.load %arg2[%c1_11, %c0_12] : memref<4x128xf32, #tpu.memory_space<vmem>>, vector<1x128xf32>
    %cst_13 = arith.constant 1.000000e-01 : f32
    %22 = vector.broadcast %cst_13 : f32 to vector<1x128xf32>
    %23 = arith.mulf %21, %22 : vector<1x128xf32>
    %cst_14 = arith.constant 0.000000e+00 : f32
    %24 = vector.broadcast %cst_14 : f32 to vector<1x128xf32>
    %25 = arith.addf %23, %24 : vector<1x128xf32>
    %c2_15 = arith.constant 2 : index
    %c0_16 = arith.constant 0 : index
    %26 = vector.load %arg2[%c2_15, %c0_16] : memref<4x128xf32, #tpu.memory_space<vmem>>, vector<1x128xf32>
    %cst_17 = arith.constant 2.000000e-01 : f32
    %27 = vector.broadcast %cst_17 : f32 to vector<1x128xf32>
    %28 = arith.mulf %26, %27 : vector<1x128xf32>
    %cst_18 = arith.constant 0.000000e+00 : f32
    %29 = vector.broadcast %cst_18 : f32 to vector<1x128xf32>
    %30 = arith.addf %28, %29 : vector<1x128xf32>
    %cst_19 = arith.constant 4.13516665 : f32
    %31 = vector.broadcast %cst_19 : f32 to vector<1x128xf32>
    %32 = arith.minimumf %30, %31 : vector<1x128xf32>
    %c3_20 = arith.constant 3 : index
    %c0_21 = arith.constant 0 : index
    %33 = vector.load %arg2[%c3_20, %c0_21] : memref<4x128xf32, #tpu.memory_space<vmem>>, vector<1x128xf32>
    %cst_22 = arith.constant 2.000000e-01 : f32
    %34 = vector.broadcast %cst_22 : f32 to vector<1x128xf32>
    %35 = arith.mulf %33, %34 : vector<1x128xf32>
    %cst_23 = arith.constant 0.000000e+00 : f32
    %36 = vector.broadcast %cst_23 : f32 to vector<1x128xf32>
    %37 = arith.addf %35, %36 : vector<1x128xf32>
    %cst_24 = arith.constant 4.13516665 : f32
    %38 = vector.broadcast %cst_24 : f32 to vector<1x128xf32>
    %39 = arith.minimumf %37, %38 : vector<1x128xf32>
    %40 = arith.mulf %20, %6 : vector<1x128xf32>
    %41 = arith.addf %40, %12 : vector<1x128xf32>
    %42 = arith.mulf %25, %9 : vector<1x128xf32>
    %43 = arith.addf %42, %15 : vector<1x128xf32>
    %44 = math.exp %32 : vector<1x128xf32>
    %45 = arith.mulf %44, %6 : vector<1x128xf32>
    %46 = math.exp %39 : vector<1x128xf32>
    %47 = arith.mulf %46, %9 : vector<1x128xf32>
    %cst_25 = arith.constant 5.000000e-01 : f32
    %48 = vector.broadcast %cst_25 : f32 to vector<1x128xf32>
    %49 = arith.mulf %48, %45 : vector<1x128xf32>
    %50 = arith.subf %41, %49 : vector<1x128xf32>
    %cst_26 = arith.constant 0.000000e+00 : f32
    %cst_27 = arith.constant 6.300000e+01 : f32
    %51 = vector.broadcast %cst_26 : f32 to vector<1x128xf32>
    %52 = arith.maximumf %51, %50 : vector<1x128xf32>
    %53 = vector.broadcast %cst_27 : f32 to vector<1x128xf32>
    %54 = arith.minimumf %53, %52 : vector<1x128xf32>
    %c0_28 = arith.constant 0 : index
    %c0_29 = arith.constant 0 : index
    %55 = vector.load %arg3[%c0_28, %c0_29] : memref<4x128xf32, #tpu.memory_space<vmem>>, vector<1x128xf32>
    tpu.vector_store %arg3[%c0_28, %c0_29], %54 {strides = array<i32>} : memref<4x128xf32, #tpu.memory_space<vmem>>, vector<1x128xf32>,
    %cst_30 = arith.constant 5.000000e-01 : f32
    %56 = vector.broadcast %cst_30 : f32 to vector<1x128xf32>
    %57 = arith.mulf %56, %47 : vector<1x128xf32>
    %58 = arith.subf %43, %57 : vector<1x128xf32>
    %cst_31 = arith.constant 0.000000e+00 : f32
    %cst_32 = arith.constant 6.300000e+01 : f32
    %59 = vector.broadcast %cst_31 : f32 to vector<1x128xf32>
    %60 = arith.maximumf %59, %58 : vector<1x128xf32>
    %61 = vector.broadcast %cst_32 : f32 to vector<1x128xf32>
    %62 = arith.minimumf %61, %60 : vector<1x128xf32>
    %c1_33 = arith.constant 1 : index
    %c0_34 = arith.constant 0 : index
    %63 = vector.load %arg3[%c1_33, %c0_34] : memref<4x128xf32, #tpu.memory_space<vmem>>, vector<1x128xf32>
    tpu.vector_store %arg3[%c1_33, %c0_34], %62 {strides = array<i32>} : memref<4x128xf32, #tpu.memory_space<vmem>>, vector<1x128xf32>,
    %cst_35 = arith.constant 5.000000e-01 : f32
    %64 = vector.broadcast %cst_35 : f32 to vector<1x128xf32>
    %65 = arith.mulf %64, %45 : vector<1x128xf32>
    %66 = arith.addf %41, %65 : vector<1x128xf32>
    %cst_36 = arith.constant 0.000000e+00 : f32
    %cst_37 = arith.constant 6.300000e+01 : f32
    %67 = vector.broadcast %cst_36 : f32 to vector<1x128xf32>
    %68 = arith.maximumf %67, %66 : vector<1x128xf32>
    %69 = vector.broadcast %cst_37 : f32 to vector<1x128xf32>
    %70 = arith.minimumf %69, %68 : vector<1x128xf32>
    %c2_38 = arith.constant 2 : index
    %c0_39 = arith.constant 0 : index
    %71 = vector.load %arg3[%c2_38, %c0_39] : memref<4x128xf32, #tpu.memory_space<vmem>>, vector<1x128xf32>
    tpu.vector_store %arg3[%c2_38, %c0_39], %70 {strides = array<i32>} : memref<4x128xf32, #tpu.memory_space<vmem>>, vector<1x128xf32>,
    %cst_40 = arith.constant 5.000000e-01 : f32
    %72 = vector.broadcast %cst_40 : f32 to vector<1x128xf32>
    %73 = arith.mulf %72, %47 : vector<1x128xf32>
    %74 = arith.addf %43, %73 : vector<1x128xf32>
    %cst_41 = arith.constant 0.000000e+00 : f32
    %cst_42 = arith.constant 6.300000e+01 : f32
    %75 = vector.broadcast %cst_41 : f32 to vector<1x128xf32>
    %76 = arith.maximumf %75, %74 : vector<1x128xf32>
    %77 = vector.broadcast %cst_42 : f32 to vector<1x128xf32>
    %78 = arith.minimumf %77, %76 : vector<1x128xf32>
    %c3_43 = arith.constant 3 : index
    %c0_44 = arith.constant 0 : index
    %79 = vector.load %arg3[%c3_43, %c0_44] : memref<4x128xf32, #tpu.memory_space<vmem>>, vector<1x128xf32>
    tpu.vector_store %arg3[%c3_43, %c0_44], %78 {strides = array<i32>} : memref<4x128xf32, #tpu.memory_space<vmem>>, vector<1x128xf32>,
    return
  }
  func.func @transform_0(%arg0: i32) -> (i32, i32) {
    %c0_i32 = arith.constant 0 : i32
    %c0_i32_0 = arith.constant 0 : i32
    return %c0_i32, %arg0 : i32, i32
  }
  func.func @transform_1(%arg0: i32) -> (i32, i32) {
    %c0_i32 = arith.constant 0 : i32
    %c0_i32_0 = arith.constant 0 : i32
    return %c0_i32, %arg0 : i32, i32
  }
  func.func @transform_2(%arg0: i32) -> (i32, i32) {
    %c0_i32 = arith.constant 0 : i32
    %c0_i32_0 = arith.constant 0 : i32
    return %c0_i32, %arg0 : i32, i32
  }
}

</mosaic_0001>

<bundles_post_ra>
// kernel: _forward_core.5
= control target key start
LH: loop header
LB: loop body
LE: loop exit
PB: predicated region body
PF: predicated region fallthrough
CT: control target
= control target key end

     0   :  { %s391_s12 = smov 0   ;;  %s420_s0 = inlined_call_operand.vmem [shape: bf16[2,16,36], index: 0, kind: input, shape index: {}]   ;;  %s421_s1 = inlined_call_operand.vmem [shape: bf16[36,128], index: 1, kind: input, shape index: {}]   ;;  %s422_s2 = inlined_call_operand.vmem [shape: f32[1,128], index: 2, kind: input, shape index: {}]   ;;  %s423_s3 = inlined_call_operand.vmem [shape: f32[2,16,128], index: 3, kind: output, shape index: {}]  }
   0x1 LB: > { %s314_s13 = sadd.s32 4294967295, %s367_s12   ;;  %p318_p0 = scmp.ge.s32.totalorder %s367_s12, 1  ;;  %s367_s12 = sphi %s391_s12, %s13_s12  }
   0x2   : > { %p137_p1 = scmp.lt.s32.totalorder %s367_s12, 3 }
   0x4   : > { %p138_p2 = pnand %p318_p0, %p137_p1 }
   0x5   : > { %v357_v0 = vld [vmem:[%s421_s1] sm:$0xff] (!%p138_p2)   ;;  %v369_v1 = vmov (!%p138_p2), 0.0   ;;  %v358_v2 = vld [vmem:[%s421_s1 + $0x8] sm:$0xff] (!%p138_p2)   ;;  %v359_v3 = vld [vmem:[%s421_s1 + $0x10] ss:$0 sps:$4 sm:$0x33] (!%p138_p2)  }
   0x6   : > { %141 = sbr.rel (%p138_p2) target bundleno = 237 (0xed), region = 32  ;;  %337 = vmatprep.subr.bf16.mxu0 (!%p138_p2), %v369_v1  ;;  %vm370_vm0 = vmmov (!%p138_p2), 0   ;;  %p161_p3 = scmp.lt.s32.totalorder (!%p138_p2), %s314_s13, 1  ;;  %vm210_vm1 = vcmask (!%p138_p2), 1041408   ;;  %vm206_vm2 = vcmask (!%p138_p2), 293888  }
   0x7   : > { %338 = vmatpush3.bf16.msra.mxu0 (!%p138_p2), %v357_v0  ;;  %343 = vmatprep.mubr.msk.bf16.mxu0 (!%p138_p2), %vm370_vm0, %v369_v1  ;;  %v212_v4 = vsel (!%p138_p2), %vm210_vm1, %v359_v3, 0  ;;  %v323_v6 = vld [vmem:[%s422_s2] ss:$0 sm:$0xff] (!%p138_p2) }
   0x8   : > { %339 = vmatprep.subr.bf16.mxu0 (!%p138_p2), %v369_v1 }
   0xb   : > { %340 = vmatpush3.bf16.msra.mxu0 (!%p138_p2), %v358_v2 }
   0xc   : > { %341 = vmatprep.subr.bf16.mxu0 (!%p138_p2), %v369_v1 }
   0xd   : > { %s425_s13 = smov (!%p161_p3, %s314_s13), 1 }
   0xe   : > { %s331_s20 = sshll.u32 %s425_s13, 3  ;;  %s332_s26 = sshll.u32 %s425_s13, 4 }
   0xf   : > { %s165_s23 = scalar_lea.vmem %s420_s0, %s331_s20  ;;  %342 = vmatpush3.bf16.msra.mxu0 %v212_v4  ;;  %s170_s29 = scalar_lea.vmem %s423_s3, %s332_s26 }
  0x10   : > { %v360_v5 = vld [vmem:[%s165_s23] sm:$0xff]  }
  0x12   : > { %344 = vmatmul.mubr.msk.bf16.vlgmr.msra.gmra.mrb[0].mxu0 %vm206_vm2, %v360_v5 }
  0xe5   : > { %v248_v7 = vpop.f32.mrb[0].mxu0 }
  0xe6   : > { %v249_v8 = vadd.f32 %v323_v6, %v248_v7  ;;  %v345_v9 = vpop.f32.mrb[1].mxu0 }
  0xe7   : > { %v251_v10 = vpop.f32.mrb[2].mxu0 }
  0xe8   : > { %v255_v11 = vmax.f32 %v249_v8, 0.0  ;;  %v252_v12 = vadd.f32 %v323_v6, %v251_v10  ;;  %v346_v13 = vpop.f32.mrb[3].mxu0 }
  0xea   : > { %257 = vst [vmem:[%s170_s29] sm:$0xff] %v255_v11  ;;  %v256_v14 = vmax.f32 %v252_v12, 0.0 }
  0xec   : > { %258 = vst [vmem:[%s170_s29 + $0x8] sm:$0xff] %v256_v14 }
  0xed PF: > { %s13_s12 = sadd.s32 1, %s367_s12  }
  0xee   : > { %p10_p4 = scmp.ge.s32.totalorder %s13_s12, 4  }
  0xf0   :  { %12 = sbr.rel (!%p10_p4) target bundleno = 1 (0x1), region = 62 }

// kernel: _forward_core.6
= control target key start
LH: loop header
LB: loop body
LE: loop exit
PB: predicated region body
PF: predicated region fallthrough
CT: control target
= control target key end

     0   :  { %s2163_s18 = smov 0   ;;  %s2526_s0 = inlined_call_operand.vmem [shape: f32[2,6,6,128], index: 0, kind: input, shape index: {}]   ;;  %s2527_s1 = inlined_call_operand.vmem [shape: bf16[3,3,128,32], index: 1, kind: input, shape index: {}]   ;;  %s2528_s2 = inlined_call_operand.vmem [shape: f32[1,32], index: 2, kind: input, shape index: {}]   ;;  %s2529_s3 = inlined_call_operand.vmem [shape: bf16[32,128], index: 3, kind: input, shape index: {}]   ;;  %s2530_s4 = inlined_call_operand.vmem [shape: f32[1,128], index: 4, kind: input, shape index: {}]   ;;  %s2531_s5 = inlined_call_operand.vmem [shape: f32[2,16,128], index: 5, kind: output, shape index: {}]  }
   0x1 LB: > { %s1468_s19 = sadd.s32 4294967295, %s2129_s18   ;;  %p1472_p0 = scmp.ge.s32.totalorder %s2129_s18, 1  ;;  %s2129_s18 = sphi %s2163_s18, %s15_s18  }
   0x2   : > { %p187_p1 = scmp.lt.s32.totalorder %s2129_s18, 3 }
   0x4   : > { %p188_p2 = pnand %p1472_p0, %p187_p1 }
   0x5   : > { %v2023_v0 = vld [vmem:[%s2527_s1] sm:$0xff] (!%p188_p2)   ;;  %v2131_v1 = vmov (!%p188_p2), 0.0   ;;  %v2025_v3 = vld [vmem:[%s2527_s1 + $0x8] sm:$0xff] (!%p188_p2)   ;;  %vm2132_vm0 = vmmov (!%p188_p2), 0   ;;  %p215_p3 = scmp.lt.s32.totalorder (!%p188_p2), %s1468_s19, 1  ;;  %v2027_v5 = vld [vmem:[%s2527_s1 + $0x10] sm:$0xff] (!%p188_p2)  }
   0x6   : > { %191 = sbr.rel (%p188_p2) target bundleno = 633 (0x279), region = 40  ;;  %1792 = vmatprep.subr.bf16.mxu1 (!%p188_p2), %v2131_v1  ;;  %1872 = vmatprep.subr.bf16.mxu0 (!%p188_p2), %v2131_v1  ;;  %v2024_v2 = vld [vmem:[%s2527_s1 + $0x100] sm:$0xff] (!%p188_p2)   ;;  %v2026_v4 = vld [vmem:[%s2527_s1 + $0x108] sm:$0xff] (!%p188_p2)   ;;  %v2028_v6 = vld [vmem:[%s2527_s1 + $0x110] sm:$0xff] (!%p188_p2)   ;;  %vm1349_vm1 = vcmask (!%p188_p2), 261120  }
   0x7   : > { %1793 = vmatpush3.bf16.msra.mxu1 (!%p188_p2), %v2023_v0  ;;  %1808 = vmatprep.mubr.msk.bf16.mxu1 (!%p188_p2), %vm2132_vm0, %v2131_v1  ;;  %v2029_v7 = vld [vmem:[%s2527_s1 + $0x18] sm:$0xff] (!%p188_p2)   ;;  %v2031_v9 = vld [vmem:[%s2527_s1 + $0x20] sm:$0xff] (!%p188_p2)   ;;  %v2033_v11 = vld [vmem:[%s2527_s1 + $0x28] sm:$0xff] (!%p188_p2)  }
   0x8   : > { %1873 = vmatpush3.bf16.msra.mxu0 (!%p188_p2), %v2024_v2  ;;  %1794 = vmatprep.subr.bf16.mxu1 (!%p188_p2), %v2131_v1  ;;  %v2030_v8 = vld [vmem:[%s2527_s1 + $0x118] sm:$0xff] (!%p188_p2)   ;;  %v2032_v10 = vld [vmem:[%s2527_s1 + $0x120] sm:$0xff] (!%p188_p2)   ;;  %v2034_v12 = vld [vmem:[%s2527_s1 + $0x128] sm:$0xff] (!%p188_p2)  }
   0x9   : > { %1874 = vmatprep.subr.bf16.mxu0 (!%p188_p2), %v2131_v1  ;;  %1888 = vmatprep.mubr.msk.bf16.mxu0 (!%p188_p2), %vm2132_vm0, %v2131_v1  ;;  %v2035_v13 = vld [vmem:[%s2527_s1 + $0x30] sm:$0xff] (!%p188_p2)   ;;  %v2037_v16 = vld [vmem:[%s2527_s1 + $0x38] sm:$0xff] (!%p188_p2)   ;;  %v2041_v22 = vld [vmem:[%s2527_s1 + $0x40] sm:$0xff] (!%p188_p2)  }
   0xa   : > { %v2036_v14 = vld [vmem:[%s2527_s1 + $0x130] sm:$0xff] (!%p188_p2)   ;;  %v2038_v20 = vld [vmem:[%s2527_s1 + $0x138] sm:$0xff] (!%p188_p2)   ;;  %v2044_v24 = vld [vmem:[%s2527_s1 + $0x140] sm:$0xff] (!%p188_p2)  }
   0xb   : > { %1795 = vmatpush3.bf16.msra.mxu1 (!%p188_p2), %v2025_v3  ;;  %v2045_v25 = vld [vmem:[%s2527_s1 + $0x48] sm:$0xff] (!%p188_p2)   ;;  %v2047_v27 = vld [vmem:[%s2527_s1 + $0x50] sm:$0xff] (!%p188_p2)   ;;  %v2049_v29 = vld [vmem:[%s2527_s1 + $0x58] sm:$0xff] (!%p188_p2)  }
   0xc   : > { %1875 = vmatpush3.bf16.msra.mxu0 (!%p188_p2), %v2026_v4  ;;  %1796 = vmatprep.subr.bf16.mxu1 (!%p188_p2), %v2131_v1  ;;  %v2046_v26 = vld [vmem:[%s2527_s1 + $0x148] sm:$0xff] (!%p188_p2)   ;;  %v2048_v28 = vld [vmem:[%s2527_s1 + $0x150] sm:$0xff] (!%p188_p2)   ;;  %v2050_v30 = vld [vmem:[%s2527_s1 + $0x158] sm:$0xff] (!%p188_p2)  }
   0xd   : > { %s2533_s19 = smov (!%p215_p3, %s1468_s19), 1  ;;  %1876 = vmatprep.subr.bf16.mxu0 %v2131_v1  ;;  %v2051_v31 = vld [vmem:[%s2527_s1 + $0x60] sm:$0xff]   ;;  %v2053_v33 = vld [vmem:[%s2527_s1 + $0x68] sm:$0xff]   ;;  %v2055_v35 = vld [vmem:[%s2527_s1 + $0x70] sm:$0xff]  }
   0xe   : > { %s2012_s11 = smul.u32 48, %s2533_s19  ;;  %v2052_v32 = vld [vmem:[%s2527_s1 + $0x160] sm:$0xff]   ;;  %v2054_v34 = vld [vmem:[%s2527_s1 + $0x168] sm:$0xff]   ;;  %v2056_v36 = vld [vmem:[%s2527_s1 + $0x170] sm:$0xff]   ;;  %s1707_s17 = sshll.u32 %s2533_s19, 4 }
   0xf   : > { %1797 = vmatpush3.bf16.msra.mxu1 %v2027_v5  ;;  %v2057_v38 = vld [vmem:[%s2527_s1 + $0x78] sm:$0xff]   ;;  %v2061_v44 = vld [vmem:[%s2527_s1 + $0x80] sm:$0xff]   ;;  %v2065_v47 = vld [vmem:[%s2527_s1 + $0x88] sm:$0xff]   ;;  %s224_s23 = scalar_lea.vmem %s2531_s5, %s1707_s17 }
  0x10   : > { %1877 = vmatpush3.bf16.msra.mxu0 %v2028_v6  ;;  %1798 = vmatprep.subr.bf16.mxu1 %v2131_v1  ;;  %s2220_s20 = scalar_lea.vmem %s2526_s0, %s2012_s11  ;;  %v2058_v39 = vld [vmem:[%s2527_s1 + $0x178] sm:$0xff]   ;;  %v2064_v46 = vld [vmem:[%s2527_s1 + $0x180] sm:$0xff]   ;;  %v2066_v48 = vld [vmem:[%s2527_s1 + $0x188] sm:$0xff]  }
  0x11   : > { %1878 = vmatprep.subr.bf16.mxu0 %v2131_v1  ;;  %v2039_v15 = vld [vmem:[%s2220_s20] ss:$8 sps:$4 sm:$0xff]   ;;  %v2040_v17 = vld [vmem:[%s2220_s20 + $0x10] ss:$8 sps:$4 sm:$0xff]  }
  0x12   : > { %v2042_v18 = vld [vmem:[%s2220_s20 + $0x9] ss:$8 sps:$4 sm:$0xff]   ;;  %v2043_v19 = vld [vmem:[%s2220_s20 + $0x19] ss:$8 sps:$4 sm:$0xff]   ;;  %v245_v21 = vpack.c.bf16 %v2040_v17, %v2039_v15 }
  0x13   : > { %1799 = vmatpush3.bf16.msra.mxu1 %v2029_v7  ;;  %v729_v23 = vpack.c.bf16 %v2043_v19, %v2042_v18  ;;  %v2059_v37 = vld [vmem:[%s2220_s20 + $0x1] ss:$8 sps:$4 sm:$0xff]   ;;  %v2060_v40 = vld [vmem:[%s2220_s20 + $0x11] ss:$8 sps:$4 sm:$0xff]  }
  0x14   : > { %1879 = vmatpush3.bf16.msra.mxu0 %v2030_v8  ;;  %1800 = vmatprep.subr.bf16.mxu1 %v2131_v1  ;;  %v2062_v41 = vld [vmem:[%s2220_s20 + $0xa] ss:$8 sps:$4 sm:$0xff]   ;;  %v2063_v42 = vld [vmem:[%s2220_s20 + $0x1a] ss:$8 sps:$4 sm:$0xff]   ;;  %v365_v43 = vpack.c.bf16 %v2060_v40, %v2059_v37 }
  0x15   : > { %1880 = vmatprep.subr.bf16.mxu0 %v2131_v1  ;;  %v850_v45 = vpack.c.bf16 %v2063_v42, %v2062_v41  ;;  %v2067_v49 = vld [vmem:[%s2527_s1 + $0x90] sm:$0xff]   ;;  %v2069_v51 = vld [vmem:[%s2527_s1 + $0x98] sm:$0xff]   ;;  %v2071_v53 = vld [vmem:[%s2527_s1 + $0xa0] sm:$0xff]  }
  0x16   : > { %v2068_v50 = vld [vmem:[%s2527_s1 + $0x190] sm:$0xff]   ;;  %v2070_v52 = vld [vmem:[%s2527_s1 + $0x198] sm:$0xff]   ;;  %v2072_v54 = vld [vmem:[%s2527_s1 + $0x1a0] sm:$0xff]  }
  0x17   : > { %1801 = vmatpush3.bf16.msra.mxu1 %v2031_v9  ;;  %v2073_v55 = vld [vmem:[%s2527_s1 + $0xa8] sm:$0xff]   ;;  %v2075_v57 = vld [vmem:[%s2527_s1 + $0xb0] sm:$0xff]   ;;  %v2077_v60 = vld [vmem:[%s2527_s1 + $0xb8] sm:$0xff]  }
  0x18   : > { %1881 = vmatpush3.bf16.msra.mxu0 %v2032_v10  ;;  %1802 = vmatprep.subr.bf16.mxu1 %v2131_v1  ;;  %v2074_v56 = vld [vmem:[%s2527_s1 + $0x1a8] sm:$0xff]   ;;  %v2076_v58 = vld [vmem:[%s2527_s1 + $0x1b0] sm:$0xff]   ;;  %v2078_v0 = vld [vmem:[%s2527_s1 + $0x1b8] sm:$0xff]  }
  0x19   : > { %1882 = vmatprep.subr.bf16.mxu0 %v2131_v1  ;;  %v2079_v59 = vld [vmem:[%s2220_s20 + $0x2] ss:$8 sps:$4 sm:$0xff]   ;;  %v2080_v61 = vld [vmem:[%s2220_s20 + $0x12] ss:$8 sps:$4 sm:$0xff]  }
  0x1a   : > { %v2082_v62 = vld [vmem:[%s2220_s20 + $0x10] ss:$8 sps:$4 sm:$0xff]   ;;  %v2083_v63 = vld [vmem:[%s2220_s20 + $0x20] ss:$8 sps:$4 sm:$0xff]   ;;  %v486_v2 = vpack.c.bf16 %v2080_v61, %v2079_v59 }
  0x1b   : > { %1803 = vmatpush3.bf16.msra.mxu1 %v2033_v11  ;;  %v2081_v3 = vld [vmem:[%s2527_s1 + $0xc0] sm:$0xff]   ;;  %v972_v4 = vpack.c.bf16 %v2083_v63, %v2082_v62  ;;  %v2085_v6 = vld [vmem:[%s2527_s1 + $0xc8] sm:$0xff]   ;;  %v2087_v8 = vld [vmem:[%s2527_s1 + $0xd0] sm:$0xff]  }
  0x1c   : > { %1883 = vmatpush3.bf16.msra.mxu0 %v2034_v12  ;;  %1804 = vmatprep.subr.bf16.mxu1 %v2131_v1  ;;  %v2084_v5 = vld [vmem:[%s2527_s1 + $0x1c0] sm:$0xff]   ;;  %v2086_v7 = vld [vmem:[%s2527_s1 + $0x1c8] sm:$0xff]   ;;  %v2088_v9 = vld [vmem:[%s2527_s1 + $0x1d0] sm:$0xff]  }
  0x1d   : > { %1884 = vmatprep.subr.bf16.mxu0 %v2131_v1  ;;  %v2089_v10 = vld [vmem:[%s2527_s1 + $0xd8] sm:$0xff]   ;;  %v2091_v12 = vld [vmem:[%s2527_s1 + $0xe0] sm:$0xff]   ;;  %v2094_v15 = vld [vmem:[%s2527_s1 + $0x1e8] sm:$0xff]  }
  0x1e   : > { %v2090_v11 = vld [vmem:[%s2527_s1 + $0x1d8] sm:$0xff]   ;;  %v2096_v17 = vld [vmem:[%s2527_s1 + $0x1f0] sm:$0xff]   ;;  %v2113_v37 = vld [vmem:[%s2529_s3] sm:$0xff]  }
  0x1f   : > { %1805 = vmatpush3.bf16.msra.mxu1 %v2035_v13  ;;  %v2092_v13 = vld [vmem:[%s2527_s1 + $0x1e0] sm:$0xff]   ;;  %v2099_v18 = vld [vmem:[%s2220_s20 + $0x8] ss:$8 sps:$4 sm:$0xff]  }
  0x20   : > { %1885 = vmatpush3.bf16.msra.mxu0 %v2036_v14  ;;  %1806 = vmatprep.subr.bf16.mxu1 %v2131_v1  ;;  %v2093_v14 = vld [vmem:[%s2527_s1 + $0xe8] sm:$0xff]   ;;  %v2100_v19 = vld [vmem:[%s2220_s20 + $0x18] ss:$8 sps:$4 sm:$0xff]  }
  0x21   : > { %1886 = vmatprep.subr.bf16.mxu0 %v2131_v1 }
  0x23   : > { %1807 = vmatpush3.bf16.msra.mxu1 %v2037_v16  ;;  %v2095_v16 = vld [vmem:[%s2527_s1 + $0xf0] sm:$0xff]  }
  0x24   : > { %1887 = vmatpush3.bf16.msra.mxu0 %v2038_v20  ;;  %1812 = vmatprep.subr.bf16.mxu1 %v2131_v1  ;;  %v2097_v20 = vld [vmem:[%s2527_s1 + $0xf8] sm:$0xff]  }
  0x25   : > { %1892 = vmatprep.subr.bf16.mxu0 %v2131_v1 }
  0x26   : > { %1809 = vmatmul.mubr.bf16.vlgmr.msra.gmra.mrb[0].mxu1 %v245_v21  ;;  %v2101_v21 = vld [vmem:[%s2220_s20 + $0x11] ss:$8 sps:$4 sm:$0xff]  }
  0x27   : > { %1813 = vmatpush3.bf16.msra.mxu1 %v2041_v22  ;;  %1889 = vmatmul.mubr.bf16.vlgmr.msra.gmra.mrb[0].mxu0 %v729_v23  ;;  %v2102_v22 = vld [vmem:[%s2220_s20 + $0x21] ss:$8 sps:$4 sm:$0xff]   ;;  %v2098_v23 = vld [vmem:[%s2527_s1 + $0x1f8] sm:$0xff]  }
  0x28   : > { %1893 = vmatpush3.bf16.msra.mxu0 %v2044_v24  ;;  %1814 = vmatprep.subr.bf16.mxu1 %v2131_v1  ;;  %v608_v24 = vpack.c.bf16 %v2100_v19, %v2099_v18 }
  0x29   : > { %1894 = vmatprep.subr.bf16.mxu0 %v2131_v1  ;;  %1828 = vmatprep.mubr.msk.bf16.mxu1 %vm2132_vm0, %v2131_v1 }
  0x2a   : > { %1908 = vmatprep.mubr.msk.bf16.mxu0 %vm2132_vm0, %v2131_v1 }
  0x2b   : > { %1815 = vmatpush3.bf16.msra.mxu1 %v2045_v25  ;;  %v1093_v25 = vpack.c.bf16 %v2102_v22, %v2101_v21 }
  0x2c   : > { %1895 = vmatpush3.bf16.msra.mxu0 %v2046_v26  ;;  %1816 = vmatprep.subr.bf16.mxu1 %v2131_v1  ;;  %v2103_v26 = vld [vmem:[%s2527_s1 + $0x200] sm:$0xff]  }
  0x2d   : > { %1896 = vmatprep.subr.bf16.mxu0 %v2131_v1 }
  0x2f   : > { %1817 = vmatpush3.bf16.msra.mxu1 %v2047_v27  ;;  %v2104_v27 = vld [vmem:[%s2527_s1 + $0x208] sm:$0xff]  }
  0x30   : > { %1897 = vmatpush3.bf16.msra.mxu0 %v2048_v28  ;;  %1818 = vmatprep.subr.bf16.mxu1 %v2131_v1  ;;  %v2105_v28 = vld [vmem:[%s2527_s1 + $0x210] sm:$0xff]  }
  0x31   : > { %1898 = vmatprep.subr.bf16.mxu0 %v2131_v1 }
  0x33   : > { %1819 = vmatpush3.bf16.msra.mxu1 %v2049_v29  ;;  %v2106_v29 = vld [vmem:[%s2527_s1 + $0x218] sm:$0xff]  }
  0x34   : > { %1899 = vmatpush3.bf16.msra.mxu0 %v2050_v30  ;;  %1820 = vmatprep.subr.bf16.mxu1 %v2131_v1  ;;  %v2107_v30 = vld [vmem:[%s2527_s1 + $0x220] sm:$0xff]  }
  0x35   : > { %1900 = vmatprep.subr.bf16.mxu0 %v2131_v1 }
  0x37   : > { %1821 = vmatpush3.bf16.msra.mxu1 %v2051_v31  ;;  %v2108_v31 = vld [vmem:[%s2527_s1 + $0x228] sm:$0xff]  }
  0x38   : > { %1901 = vmatpush3.bf16.msra.mxu0 %v2052_v32  ;;  %1822 = vmatprep.subr.bf16.mxu1 %v2131_v1  ;;  %v2109_v32 = vld [vmem:[%s2527_s1 + $0x230] sm:$0xff]  }
  0x39   : > { %1902 = vmatprep.subr.bf16.mxu0 %v2131_v1 }
  0x3b   : > { %1823 = vmatpush3.bf16.msra.mxu1 %v2053_v33  ;;  %v2111_v33 = vld [vmem:[%s2220_s20 + $0x12] ss:$8 sps:$4 sm:$0xff]  }
  0x3c   : > { %1903 = vmatpush3.bf16.msra.mxu0 %v2054_v34  ;;  %1824 = vmatprep.subr.bf16.mxu1 %v2131_v1  ;;  %v2112_v34 = vld [vmem:[%s2220_s20 + $0x22] ss:$8 sps:$4 sm:$0xff]  }
  0x3d   : > { %1904 = vmatprep.subr.bf16.mxu0 %v2131_v1 }
  0x3f   : > { %1825 = vmatpush3.bf16.msra.mxu1 %v2055_v35  ;;  %v2110_v35 = vld [vmem:[%s2527_s1 + $0x238] sm:$0xff]  }
  0x40   : > { %1905 = vmatpush3.bf16.msra.mxu0 %v2056_v36  ;;  %1826 = vmatprep.subr.bf16.mxu1 %v2131_v1  ;;  %v1214_v36 = vpack.c.bf16 %v2112_v34, %v2111_v33 }
  0x41   : > { %1906 = vmatprep.subr.bf16.mxu0 %v2131_v1 }
  0x43   : > { %1827 = vmatpush3.bf16.msra.mxu1 %v2057_v38  ;;  %v2114_v38 = vld [vmem:[%s2529_s3 + $0x8] sm:$0xff]  }
  0x44   : > { %1907 = vmatpush3.bf16.msra.mxu0 %v2058_v39  ;;  %1832 = vmatprep.subr.bf16.mxu1 %v2131_v1 }
  0x45   : > { %1912 = vmatprep.subr.bf16.mxu0 %v2131_v1 }
  0x46   : > { %1829 = vmatmul.mubr.bf16.vlgmr.msra.gmra.mrb[0].mxu1 %v365_v43  ;;  %v1476_v43 = vld [vmem:[%s2528_s2] ss:$0 sm:$0xff] }
  0x47   : > { %1833 = vmatpush3.bf16.msra.mxu1 %v2061_v44  ;;  %1909 = vmatmul.mubr.bf16.vlgmr.msra.gmra.mrb[0].mxu0 %v850_v45 }
  0x48   : > { %1913 = vmatpush3.bf16.msra.mxu0 %v2064_v46  ;;  %1834 = vmatprep.subr.bf16.mxu1 %v2131_v1 }
  0x49   : > { %1914 = vmatprep.subr.bf16.mxu0 %v2131_v1  ;;  %1848 = vmatprep.mubr.msk.bf16.mxu1 %vm2132_vm0, %v2131_v1 }
  0x4a   : > { %1928 = vmatprep.mubr.msk.bf16.mxu0 %vm2132_vm0, %v2131_v1 }
  0x4b   : > { %1835 = vmatpush3.bf16.msra.mxu1 %v2065_v47 }
  0x4c   : > { %1915 = vmatpush3.bf16.msra.mxu0 %v2066_v48  ;;  %1836 = vmatprep.subr.bf16.mxu1 %v2131_v1 }
  0x4d   : > { %1916 = vmatprep.subr.bf16.mxu0 %v2131_v1 }
  0x4f   : > { %1837 = vmatpush3.bf16.msra.mxu1 %v2067_v49 }
  0x50   : > { %1917 = vmatpush3.bf16.msra.mxu0 %v2068_v50  ;;  %1838 = vmatprep.subr.bf16.mxu1 %v2131_v1 }
  0x51   : > { %1918 = vmatprep.subr.bf16.mxu0 %v2131_v1 }
  0x53   : > { %1839 = vmatpush3.bf16.msra.mxu1 %v2069_v51 }
  0x54   : > { %1919 = vmatpush3.bf16.msra.mxu0 %v2070_v52  ;;  %1840 = vmatprep.subr.bf16.mxu1 %v2131_v1 }
  0x55   : > { %1920 = vmatprep.subr.bf16.mxu0 %v2131_v1 }
  0x57   : > { %1841 = vmatpush3.bf16.msra.mxu1 %v2071_v53 }
  0x58   : > { %1921 = vmatpush3.bf16.msra.mxu0 %v2072_v54  ;;  %1842 = vmatprep.subr.bf16.mxu1 %v2131_v1  ;;  %v1701_v54 = vld [vmem:[%s2530_s4] ss:$0 sm:$0xff] }
  0x59   : > { %1922 = vmatprep.subr.bf16.mxu0 %v2131_v1 }
  0x5b   : > { %1843 = vmatpush3.bf16.msra.mxu1 %v2073_v55 }
  0x5c   : > { %1923 = vmatpush3.bf16.msra.mxu0 %v2074_v56  ;;  %1844 = vmatprep.subr.bf16.mxu1 %v2131_v1 }
  0x5d   : > { %1924 = vmatprep.subr.bf16.mxu0 %v2131_v1 }
  0x5f   : > { %1845 = vmatpush3.bf16.msra.mxu1 %v2075_v57 }
  0x60   : > { %1925 = vmatpush3.bf16.msra.mxu0 %v2076_v58  ;;  %1846 = vmatprep.subr.bf16.mxu1 %v2131_v1 }
  0x61   : > { %1926 = vmatprep.subr.bf16.mxu0 %v2131_v1 }
  0x63   : > { %1847 = vmatpush3.bf16.msra.mxu1 %v2077_v60 }
  0x64   : > { %1927 = vmatpush3.bf16.msra.mxu0 %v2078_v0  ;;  %1852 = vmatprep.subr.bf16.mxu1 %v2131_v1 }
  0x65   : > { %1932 = vmatprep.subr.bf16.mxu0 %v2131_v1 }
  0x66   : > { %1849 = vmatmul.mubr.bf16.vlgmr.msra.gmra.mrb[0].mxu1 %v486_v2 }
  0x67   : > { %1853 = vmatpush3.bf16.msra.mxu1 %v2081_v3  ;;  %1929 = vmatmul.mubr.bf16.vlgmr.msra.gmra.mrb[0].mxu0 %v972_v4 }
  0x68   : > { %1933 = vmatpush3.bf16.msra.mxu0 %v2084_v5  ;;  %1854 = vmatprep.subr.bf16.mxu1 %v2131_v1  ;;  %v1394_v5 = vlaneseq }
  0x69   : > { %1934 = vmatprep.subr.bf16.mxu0 %v2131_v1  ;;  %1868 = vmatprep.mubr.msk.bf16.mxu1 %vm2132_vm0, %v2131_v1 }
  0x6a   : > { %1948 = vmatprep.mubr.msk.bf16.mxu0 %vm2132_vm0, %v2131_v1 }
  0x6b   : > { %1855 = vmatpush3.bf16.msra.mxu1 %v2085_v6 }
  0x6c   : > { %1935 = vmatpush3.bf16.msra.mxu0 %v2086_v7  ;;  %1856 = vmatprep.subr.bf16.mxu1 %v2131_v1  ;;  %v1395_v7 = vand.u32 127, %v1394_v5 }
  0x6d   : > { %1936 = vmatprep.subr.bf16.mxu0 %v2131_v1 }
  0x6e   : > { %vm1408_vm2 = vcmp.lt.s32.totalorder %v1395_v7, 3 }
  0x6f   : > { %1857 = vmatpush3.bf16.msra.mxu1 %v2087_v8 }
  0x70   : > { %1937 = vmatpush3.bf16.msra.mxu0 %v2088_v9  ;;  %1858 = vmatprep.subr.bf16.mxu1 %v2131_v1 }
  0x71   : > { %1938 = vmatprep.subr.bf16.mxu0 %v2131_v1 }
  0x73   : > { %1859 = vmatpush3.bf16.msra.mxu1 %v2089_v10 }
  0x74   : > { %1939 = vmatpush3.bf16.msra.mxu0 %v2090_v11  ;;  %1860 = vmatprep.subr.bf16.mxu1 %v2131_v1 }
  0x75   : > { %1940 = vmatprep.subr.bf16.mxu0 %v2131_v1 }
  0x77   : > { %1861 = vmatpush3.bf16.msra.mxu1 %v2091_v12 }
  0x78   : > { %1941 = vmatpush3.bf16.msra.mxu0 %v2092_v13  ;;  %1862 = vmatprep.subr.bf16.mxu1 %v2131_v1 }
  0x79   : > { %1942 = vmatprep.subr.bf16.mxu0 %v2131_v1 }
  0x7b   : > { %1863 = vmatpush3.bf16.msra.mxu1 %v2093_v14 }
  0x7c   : > { %1943 = vmatpush3.bf16.msra.mxu0 %v2094_v15  ;;  %1864 = vmatprep.subr.bf16.mxu1 %v2131_v1 }
  0x7d   : > { %1944 = vmatprep.subr.bf16.mxu0 %v2131_v1 }
  0x7f   : > { %1865 = vmatpush3.bf16.msra.mxu1 %v2095_v16 }
  0x80   : > { %1945 = vmatpush3.bf16.msra.mxu0 %v2096_v17  ;;  %1866 = vmatprep.subr.bf16.mxu1 %v2131_v1 }
  0x81   : > { %1946 = vmatprep.subr.bf16.mxu0 %v2131_v1 }
  0x83   : > { %1867 = vmatpush3.bf16.msra.mxu1 %v2097_v20 }
  0x84   : > { %1947 = vmatpush3.bf16.msra.mxu0 %v2098_v23  ;;  %1972 = vmatprep.subr.bf16.mxu1 %v2131_v1 }
  0x85   : > { %1952 = vmatprep.subr.bf16.mxu0 %v2131_v1 }
  0x86   : > { %1869 = vmatmul.mubr.bf16.vlgmr.msra.gmra.mrb[0].mxu1 %v608_v24 }
  0x87   : > { %1949 = vmatmul.mubr.bf16.vlgmr.msra.gmra.mrb[0].mxu0 %v1093_v25  ;;  %1976 = vmatprep.mubr.msk.bf16.mxu1 %vm2132_vm0, %v2131_v1 }
  0x88   : > { %1953 = vmatpush3.bf16.msra.mxu0 %v2103_v26  ;;  %1968 = vmatprep.mubr.msk.bf16.mxu0 %vm2132_vm0, %v2131_v1 }
  0x89   : > { %1954 = vmatprep.subr.bf16.mxu0 %v2131_v1  ;;  %1973 = vmatpush3.bf16.msra.mxu1 %v2113_v37 }
  0x8a   : > { %1974 = vmatprep.subr.bf16.mxu1 %v2131_v1 }
  0x8c   : > { %1955 = vmatpush3.bf16.msra.mxu0 %v2104_v27 }
  0x8d   : > { %1956 = vmatprep.subr.bf16.mxu0 %v2131_v1  ;;  %1975 = vmatpush3.bf16.msra.mxu1 %v2114_v38 }
  0x90   : > { %1957 = vmatpush3.bf16.msra.mxu0 %v2105_v28 }
  0x91   : > { %1958 = vmatprep.subr.bf16.mxu0 %v2131_v1 }
  0x94   : > { %1959 = vmatpush3.bf16.msra.mxu0 %v2106_v29 }
  0x95   : > { %1960 = vmatprep.subr.bf16.mxu0 %v2131_v1 }
  0x98   : > { %1961 = vmatpush3.bf16.msra.mxu0 %v2107_v30 }
  0x99   : > { %1962 = vmatprep.subr.bf16.mxu0 %v2131_v1 }
  0x9c   : > { %1963 = vmatpush3.bf16.msra.mxu0 %v2108_v31 }
  0x9d   : > { %1964 = vmatprep.subr.bf16.mxu0 %v2131_v1 }
  0xa0   : > { %1965 = vmatpush3.bf16.msra.mxu0 %v2109_v32 }
  0xa1   : > { %1966 = vmatprep.subr.bf16.mxu0 %v2131_v1 }
  0xa4   : > { %1967 = vmatpush3.bf16.msra.mxu0 %v2110_v35 }
  0xa7   : > { %1969 = vmatmul.mubr.bf16.vlgmr.msra.gmra.mrb[0].mxu0 %v1214_v36 }
 0x159   : > { %v708_v39 = vpop.f32.mrb[0].mxu1 }
 0x15a   : > { %v1870_v40 = vpop.f32.mrb[1].mxu1  ;;  %v1980_v44 = vadd.f32 %v1476_v43, %v708_v39 }
 0x15b   : > { %v711_v41 = vpop.f32.mrb[2].mxu1 }
 0x15c   : > { %v1871_v42 = vpop.f32.mrb[3].mxu1  ;;  %v1982_v46 = vadd.f32 %v1476_v43, %v711_v41 }
 0x17a   : > { %v1314_v45 = vpop.f32.mrb[0].mxu0 }
 0x17b   : > { %v1981_v47 = vadd.f32 %v1980_v44, %v1314_v45  ;;  %v1970_v48 = vpop.f32.mrb[1].mxu0 }
 0x17c   : > { %v1317_v49 = vpop.f32.mrb[2].mxu0 }
 0x17d   : > { %v1983_v1 = vadd.f32 %v1982_v46, %v1317_v49  ;;  %v1971_v50 = vpop.f32.mrb[3].mxu0  ;;  %v1323_v51 = vmax.f32 %v1981_v47, 0.0 }
 0x17f   : > { %v1324_v52 = vmax.f32 %v1983_v1, 0.0 }
 0x181   : > { %v1325_v53 = vpack.c.bf16 %v1324_v52, %v1323_v51 }
 0x183   : > { %1977 = vmatmul.mubr.msk.bf16.vlgmr.msra.gmra.mrb[4].mxu1 %vm1349_vm1, %v1325_v53 }
 0x256   : > { %v1387_v55 = vpop.f32.mrb[4].mxu1 }
 0x257   : > { %v1388_v56 = vadd.f32 %v1701_v54, %v1387_v55  ;;  %v1978_v57 = vpop.f32.mrb[5].mxu1 }
 0x258   : > { %v1390_v58 = vpop.f32.mrb[6].mxu1 }
 0x259   : > { %v1396_v59 = vsub.f32 0.0, %v1388_v56  ;;  %v1391_v60 = vadd.f32 %v1701_v54, %v1390_v58  ;;  %v1979_v61 = vpop.f32.mrb[7].mxu1 }
 0x25b   : > { %v1398_v62 = vmul.f32 1.442695, %v1396_v59  ;;  %v1397_v63 = vsub.f32 0.0, %v1391_v60 }
 0x25d   : > { %2115 = vpow2.f32 %v1398_v62  ;;  %v1400_v0 = vmul.f32 1.442695, %v1397_v63 }
 0x25f   : > { %2117 = vpow2.f32 %v1400_v0 }
 0x267   : > { %v2116_v2 = vpop.eup %2115 }
 0x268   : > { %v1402_v3 = vadd.f32 1.0, %v2116_v2 }
 0x269   : > { %v2118_v4 = vpop.eup %2117 }
 0x26a   : > { %2119 = vrcp.f32 %v1402_v3  ;;  %v1403_v6 = vadd.f32 1.0, %v2118_v4 }
 0x26c   : > { %2121 = vrcp.f32 %v1403_v6 }
 0x274   : > { %v2120_v8 = vpop.eup %2119 }
 0x275   : > { %v1409_v9 = vsel %vm1408_vm2, %v2120_v8, %v1388_v56 }
 0x276   : > { %v2122_v10 = vpop.eup %2121  ;;  %1411 = vst [vmem:[%s224_s23] sm:$0xff] %v1409_v9 }
 0x277   : > { %v1410_v11 = vsel %vm1408_vm2, %v2122_v10, %v1391_v60 }
 0x278   : > { %1412 = vst [vmem:[%s224_s23 + $0x8] sm:$0xff] %v1410_v11 }
 0x279 PF: > { %s15_s18 = sadd.s32 1, %s2129_s18  }
 0x27a   : > { %p12_p4 = scmp.ge.s32.totalorder %s15_s18, 4  }
 0x27c   :  { %14 = sbr.rel (!%p12_p4) target bundleno = 1 (0x1), region = 80 }

// kernel: _forward_core.7
= control target key start
LH: loop header
LB: loop body
LE: loop exit
PB: predicated region body
PF: predicated region fallthrough
CT: control target
= control target key end

     0   :  { %s120_s0 = inlined_call_operand.vmem [shape: f32[4,128], index: 0, kind: input, shape index: {}]   ;;  %s121_s1 = inlined_call_operand.vmem [shape: f32[4,128], index: 1, kind: input, shape index: {}]   ;;  %s122_s2 = inlined_call_operand.vmem [shape: f32[4,128], index: 2, kind: output, shape index: {}]  }
   0x1   :  { %v11_v0 = vld [vmem:[%s120_s0] sm:$0x1]  ;;  %v13_v1 = vld [vmem:[%s120_s0 + $0x2] sm:$0x1]  ;;  %v30_v4 = vld [vmem:[%s121_s1 + $0x3] sm:$0x1] }
   0x2   :  { %v15_v2 = vsub.f32 %v13_v1, %v11_v0  ;;  %v27_v3 = vld [vmem:[%s121_s1 + $0x2] sm:$0x1]  ;;  %v12_v5 = vld [vmem:[%s120_s0 + $0x1] sm:$0x1]  ;;  %v32_v7 = vmin.f32 %v30_v4, 4.1351666 }
   0x3   :  { %v29_v6 = vmin.f32 %v27_v3, 4.1351666  ;;  %v14_v8 = vld [vmem:[%s120_s0 + $0x3] sm:$0x1]  ;;  %v23_v15 = vld [vmem:[%s121_s1] sm:$0x1] }
   0x4   :  { %v17_v9 = vsub.f32 %v14_v8, %v12_v5  ;;  %v40_v11 = vmul.f32 1.442695, %v32_v7  ;;  %v16_v12 = vadd.f32 1.0, %v15_v2  ;;  %v25_v17 = vld [vmem:[%s121_s1 + $0x1] sm:$0x1] }
   0x5   :  { %v37_v10 = vmul.f32 1.442695, %v29_v6 }
   0x6   :  { %v18_v13 = vadd.f32 1.0, %v17_v9  ;;  %v19_v14 = vmul.f32 0.5, %v16_v12  ;;  %v33_v19 = vmul.f32 %v23_v15, %v16_v12 }
   0x7   :  { %65 = vpow2.f32 %v37_v10 }
   0x8   :  { %67 = vpow2.f32 %v40_v11  ;;  %v21_v16 = vmul.f32 0.5, %v18_v13  ;;  %v20_v18 = vadd.f32 %v19_v14, %v11_v0  ;;  %v35_v21 = vmul.f32 %v25_v17, %v18_v13 }
   0xa   :  { %v22_v20 = vadd.f32 %v21_v16, %v12_v5  ;;  %v34_v24 = vadd.f32 %v33_v19, %v20_v18 }
   0xc   :  { %v36_v26 = vadd.f32 %v35_v21, %v22_v20 }
  0x11   :  { %v66_v22 = vpop.eup %65 }
  0x12   :  { %v68_v23 = vpop.eup %67  ;;  %v39_v25 = vmul.f32 %v66_v22, %v16_v12 }
  0x13   :  { %v42_v27 = vmul.f32 %v68_v23, %v18_v13 }
  0x14   :  { %v43_v28 = vmul.f32 0.5, %v39_v25 }
  0x15   :  { %v48_v29 = vmul.f32 0.5, %v42_v27 }
  0x16   :  { %v44_v30 = vsub.f32 %v34_v24, %v43_v28  ;;  %v53_v31 = vadd.f32 %v43_v28, %v34_v24 }
  0x17   :  { %v49_v32 = vsub.f32 %v36_v26, %v48_v29  ;;  %v57_v33 = vadd.f32 %v48_v29, %v36_v26 }
  0x18   :  { %v45_v34 = vmax.f32 %v44_v30, 0.0  ;;  %v54_v35 = vmax.f32 %v53_v31, 0.0 }
  0x19   :  { %v50_v36 = vmax.f32 %v49_v32, 0.0  ;;  %v58_v37 = vmax.f32 %v57_v33, 0.0 }
  0x1a   :  { %v46_v38 = vmin.f32 %v45_v34, 63.0  ;;  %v55_v39 = vmin.f32 %v54_v35, 63.0 }
  0x1b   :  { %v51_v40 = vmin.f32 %v50_v36, 63.0  ;;  %v59_v41 = vmin.f32 %v58_v37, 63.0 }
  0x1c   :  { %47 = vst [vmem:[%s122_s2] sm:$0x1] %v46_v38  ;;  %56 = vst [vmem:[%s122_s2 + $0x2] sm:$0x1] %v55_v39 }
  0x1d   :  { %52 = vst [vmem:[%s122_s2 + $0x1] sm:$0x1] %v51_v40  ;;  %60 = vst [vmem:[%s122_s2 + $0x3] sm:$0x1] %v59_v41 }

// kernel: _forward_core.8
= control target key start
LH: loop header
LB: loop body
LE: loop exit
PB: predicated region body
PF: predicated region fallthrough
CT: control target
= control target key end

     0   :  { %s1121_s24 = smov 0   ;;  %s1280_s0 = inlined_call_operand.vmem [shape: bf16[16,512], index: 0, kind: input, shape index: {}]   ;;  %s1281_s1 = inlined_call_operand.vmem [shape: bf16[512,64], index: 1, kind: input, shape index: {}]   ;;  %s1282_s2 = inlined_call_operand.vmem [shape: f32[1,64], index: 2, kind: input, shape index: {}]   ;;  %s1283_s3 = inlined_call_operand.vmem [shape: bf16[64,64], index: 3, kind: input, shape index: {}]   ;;  %s1284_s4 = inlined_call_operand.vmem [shape: f32[1,64], index: 4, kind: input, shape index: {}]   ;;  %s1285_s5 = inlined_call_operand.vmem [shape: bf16[64,128], index: 5, kind: input, shape index: {}]   ;;  %s1286_s6 = inlined_call_operand.vmem [shape: f32[1,128], index: 6, kind: input, shape index: {}]   ;;  %s1287_s7 = inlined_call_operand.vmem [shape: f32[16,128], index: 7, kind: output, shape index: {}]  }
   0x1 LB: > { %s875_s25 = sadd.s32 4294967295, %s1077_s24   ;;  %p879_p0 = scmp.ge.s32.totalorder %s1077_s24, 1  ;;  %s1077_s24 = sphi %s1121_s24, %s17_s24  }
   0x2   : > { %p237_p1 = scmp.lt.s32.totalorder %s1077_s24, 3 }
   0x4   : > { %p238_p2 = pnand %p879_p0, %p237_p1 }
   0x5   : > { %v1023_v0 = vld [vmem:[%s1281_s1 + $0x40] sm:$0xff] (!%p238_p2)   ;;  %v1027_v4 = vld [vmem:[%s1281_s1 + $0x48] sm:$0xff] (!%p238_p2)   ;;  %v1031_v8 = vld [vmem:[%s1281_s1 + $0x50] sm:$0xff] (!%p238_p2)   ;;  %p268_p3 = scmp.lt.s32.totalorder (!%p238_p2), %s875_s25, 1  ;;  %v1079_v39 = vmov (!%p238_p2), 0.0   ;;  %vm1080_vm0 = vmmov (!%p238_p2), 0  }
   0x6   : > { %241 = sbr.rel (%p238_p2) target bundleno = 1010 (0x3f2), region = 48  ;;  %v1024_v1 = vld [vmem:[%s1281_s1 + $0xc0] sm:$0xff] (!%p238_p2)   ;;  %935 = vmatprep.subr.bf16.mxu0 (!%p238_p2), %v1023_v0  ;;  %v1028_v5 = vld [vmem:[%s1281_s1 + $0xc8] sm:$0xff] (!%p238_p2)   ;;  %v1032_v9 = vld [vmem:[%s1281_s1 + $0xd0] sm:$0xff] (!%p238_p2)   ;;  %vm678_vm1 = vcmask (!%p238_p2), 523264  }
   0x7   : > { %v1025_v2 = vld [vmem:[%s1281_s1] sm:$0xff] (!%p238_p2)   ;;  %957 = vmatprep.subr.bf16.mxu1 (!%p238_p2), %v1024_v1  ;;  %v1029_v6 = vld [vmem:[%s1281_s1 + $0x8] sm:$0xff] (!%p238_p2)   ;;  %v1033_v10 = vld [vmem:[%s1281_s1 + $0x10] sm:$0xff] (!%p238_p2)  }
   0x8   : > { %v1026_v3 = vld [vmem:[%s1281_s1 + $0x80] sm:$0xff] (!%p238_p2)   ;;  %936 = vmatpush3.bf16.msra.mxu0 (!%p238_p2), %v1025_v2  ;;  %v1030_v7 = vld [vmem:[%s1281_s1 + $0x88] sm:$0xff] (!%p238_p2)   ;;  %v1034_v11 = vld [vmem:[%s1281_s1 + $0x90] sm:$0xff] (!%p238_p2)  }
   0x9   : > { %958 = vmatpush3.bf16.msra.mxu1 (!%p238_p2), %v1026_v3  ;;  %937 = vmatprep.subr.bf16.mxu0 (!%p238_p2), %v1027_v4  ;;  %v1035_v12 = vld [vmem:[%s1281_s1 + $0x58] sm:$0xff] (!%p238_p2)   ;;  %v1039_v16 = vld [vmem:[%s1281_s1 + $0x60] sm:$0xff] (!%p238_p2)   ;;  %v1043_v20 = vld [vmem:[%s1281_s1 + $0x68] sm:$0xff] (!%p238_p2)  }
   0xa   : > { %959 = vmatprep.subr.bf16.mxu1 (!%p238_p2), %v1028_v5  ;;  %v1036_v13 = vld [vmem:[%s1281_s1 + $0xd8] sm:$0xff] (!%p238_p2)   ;;  %v1040_v17 = vld [vmem:[%s1281_s1 + $0xe0] sm:$0xff] (!%p238_p2)   ;;  %v1044_v21 = vld [vmem:[%s1281_s1 + $0xe8] sm:$0xff] (!%p238_p2)  }
   0xb   : > { %v1037_v14 = vld [vmem:[%s1281_s1 + $0x18] sm:$0xff] (!%p238_p2)   ;;  %v1041_v18 = vld [vmem:[%s1281_s1 + $0x20] sm:$0xff] (!%p238_p2)   ;;  %v1045_v22 = vld [vmem:[%s1281_s1 + $0x28] sm:$0xff] (!%p238_p2)  }
   0xc   : > { %938 = vmatpush3.bf16.msra.mxu0 (!%p238_p2), %v1029_v6  ;;  %v1038_v15 = vld [vmem:[%s1281_s1 + $0x98] sm:$0xff] (!%p238_p2)   ;;  %v1042_v19 = vld [vmem:[%s1281_s1 + $0xa0] sm:$0xff] (!%p238_p2)   ;;  %v1046_v23 = vld [vmem:[%s1281_s1 + $0xa8] sm:$0xff] (!%p238_p2)   ;;  %v806_v6 = vlaneseq (!%p238_p2) }
   0xd   : > { %960 = vmatpush3.bf16.msra.mxu1 %v1030_v7  ;;  %939 = vmatprep.subr.bf16.mxu0 %v1031_v8  ;;  %s1289_s25 = smov (!%p268_p3, %s875_s25), 1  ;;  %v1047_v24 = vld [vmem:[%s1281_s1 + $0x70] sm:$0xff]   ;;  %v1051_v28 = vld [vmem:[%s1281_s1 + $0x78] sm:$0xff]   ;;  %v1059_v38 = vld [vmem:[%s1283_s3] sm:$0xff]  }
   0xe   : > { %961 = vmatprep.subr.bf16.mxu1 %v1032_v9  ;;  %v1048_v25 = vld [vmem:[%s1281_s1 + $0xf0] sm:$0xff]   ;;  %s934_s15 = sshll.u32 %s1289_s25, 4  ;;  %v1052_v29 = vld [vmem:[%s1281_s1 + $0xf8] sm:$0xff]   ;;  %v1060_v40 = vld [vmem:[%s1283_s3 + $0x8] sm:$0xff]   ;;  %v807_v7 = vand.u32 127, %v806_v6  ;;  %s882_s9 = sshll.u32 %s1289_s25, 3 }
   0xf   : > { %v1049_v26 = vld [vmem:[%s1281_s1 + $0x30] sm:$0xff]   ;;  %s272_s26 = scalar_lea.vmem %s1280_s0, %s934_s15  ;;  %v1053_v30 = vld [vmem:[%s1281_s1 + $0x38] sm:$0xff]   ;;  %v1063_v43 = vld [vmem:[%s1285_s5] sm:$0xff]   ;;  %s276_s12 = scalar_lea.vmem %s1287_s7, %s882_s9 }
  0x10   : > { %940 = vmatpush3.bf16.msra.mxu0 %v1033_v10  ;;  %v1050_v27 = vld [vmem:[%s1281_s1 + $0xb0] sm:$0xff]   ;;  %v1054_v31 = vld [vmem:[%s1281_s1 + $0xb8] sm:$0xff]   ;;  %v278_v32 = vld [vmem:[%s272_s26] sm:$0xff]  ;;  %vm808_vm2 = vcmp.lt.s32.totalorder %v807_v7, 4 }
  0x11   : > { %962 = vmatpush3.bf16.msra.mxu1 %v1034_v11  ;;  %941 = vmatprep.subr.bf16.mxu0 %v1035_v12  ;;  %v279_v33 = vld [vmem:[%s272_s26 + $0x8] sm:$0xff]  ;;  %v884_v34 = vcombine.low %v278_v32, %v278_v32  ;;  %v885_v35 = vcombine.high %v278_v32, %v278_v32  ;;  %v1061_v41 = vld [vmem:[%s1283_s3 + $0x10] sm:$0xff]   ;;  %v1062_v42 = vld [vmem:[%s1283_s3 + $0x18] sm:$0xff]  }
  0x12   : > { %963 = vmatprep.subr.bf16.mxu1 %v1036_v13  ;;  %v886_v36 = vcombine.low %v279_v33, %v279_v33  ;;  %v887_v37 = vcombine.high %v279_v33, %v279_v33  ;;  %v1064_v44 = vld [vmem:[%s1285_s5 + $0x8] sm:$0xff]   ;;  %v883_v47 = vld [vmem:[%s1282_s2] ss:$0 sm:$0xff]  ;;  %v1065_v60 = vld [vmem:[%s1285_s5 + $0x10] sm:$0xff]  }
  0x13   : > { %589 = vmatprep.mubr.bf16.mxu0 %v885_v35  ;;  %v1066_v61 = vld [vmem:[%s1285_s5 + $0x18] sm:$0xff]   ;;  %v920_v62 = vld [vmem:[%s1284_s4] ss:$0 sm:$0xff] }
  0x14   : > { %942 = vmatpush3.bf16.msra.mxu0 %v1037_v14  ;;  %629 = vmatprep.mubr.bf16.mxu1 %v887_v37  ;;  %v926_v8 = vld [vmem:[%s1286_s6] ss:$0 sm:$0xff] }
  0x15   : > { %964 = vmatpush3.bf16.msra.mxu1 %v1038_v15  ;;  %943 = vmatprep.subr.bf16.mxu0 %v1039_v16 }
  0x16   : > { %965 = vmatprep.subr.bf16.mxu1 %v1040_v17 }
  0x18   : > { %944 = vmatpush3.bf16.msra.mxu0 %v1041_v18 }
  0x19   : > { %966 = vmatpush3.bf16.msra.mxu1 %v1042_v19  ;;  %945 = vmatprep.subr.bf16.mxu0 %v1043_v20 }
  0x1a   : > { %967 = vmatprep.subr.bf16.mxu1 %v1044_v21 }
  0x1c   : > { %946 = vmatpush3.bf16.msra.mxu0 %v1045_v22 }
  0x1d   : > { %968 = vmatpush3.bf16.msra.mxu1 %v1046_v23  ;;  %947 = vmatprep.subr.bf16.mxu0 %v1047_v24 }
  0x1e   : > { %969 = vmatprep.subr.bf16.mxu1 %v1048_v25 }
  0x20   : > { %948 = vmatpush3.bf16.msra.mxu0 %v1049_v26 }
  0x21   : > { %970 = vmatpush3.bf16.msra.mxu1 %v1050_v27  ;;  %949 = vmatprep.subr.bf16.mxu0 %v1051_v28 }
  0x22   : > { %971 = vmatprep.subr.bf16.mxu1 %v1052_v29 }
  0x24   : > { %950 = vmatpush3.bf16.msra.mxu0 %v1053_v30 }
  0x25   : > { %972 = vmatpush3.bf16.msra.mxu1 %v1054_v31  ;;  %989 = vmatprep.subr.bf16.mxu0 %v1079_v39 }
  0x26   : > { %1001 = vmatprep.subr.bf16.mxu1 %v1079_v39 }
  0x27   : > { %590 = vmatmul.mubr.bf16.vlgmr.msra.gmra.mrb[0].mxu0 %v884_v34 }
  0x28   : > { %630 = vmatmul.mubr.bf16.vlgmr.msra.gmra.mrb[0].mxu1 %v886_v36  ;;  %990 = vmatpush3.bf16.msra.mxu0 %v1059_v38 }
  0x29   : > { %991 = vmatprep.subr.bf16.mxu0 %v1079_v39  ;;  %997 = vmatprep.mubr.msk.bf16.mxu0 %vm1080_vm0, %v1079_v39 }
  0x2a   : > { %1009 = vmatprep.mubr.msk.bf16.mxu1 %vm1080_vm0, %v1079_v39  ;;  %1002 = vmatpush3.bf16.msra.mxu1 %v1063_v43 }
  0x2b   : > { %1003 = vmatprep.subr.bf16.mxu1 %v1079_v39 }
  0x2c   : > { %992 = vmatpush3.bf16.msra.mxu0 %v1060_v40 }
  0x2d   : > { %993 = vmatprep.subr.bf16.mxu0 %v1079_v39 }
  0x2e   : > { %1004 = vmatpush3.bf16.msra.mxu1 %v1064_v44 }
  0x2f   : > { %1005 = vmatprep.subr.bf16.mxu1 %v1079_v39 }
  0x30   : > { %994 = vmatpush3.bf16.msra.mxu0 %v1061_v41 }
  0x31   : > { %995 = vmatprep.subr.bf16.mxu0 %v1079_v39 }
  0x32   : > { %1006 = vmatpush3.bf16.msra.mxu1 %v1065_v60 }
  0x33   : > { %1007 = vmatprep.subr.bf16.mxu1 %v1079_v39 }
  0x34   : > { %996 = vmatpush3.bf16.msra.mxu0 %v1062_v42 }
  0x36   : > { %1008 = vmatpush3.bf16.msra.mxu1 %v1066_v61 }
  0xfa   : > { %v951_v45 = vpop.f32.mrb[0].mxu0 }
  0xfb   : > { %v973_v46 = vpop.f32.mrb[0].mxu1  ;;  %v952_v48 = vpop.f32.mrb[1].mxu0 }
  0xfc   : > { %v974_v49 = vpop.f32.mrb[1].mxu1  ;;  %v953_v50 = vadd.f32 %v952_v48, %v951_v45  ;;  %v954_v52 = vpop.f32.mrb[2].mxu0 }
  0xfd   : > { %v975_v51 = vadd.f32 %v974_v49, %v973_v46  ;;  %v976_v53 = vpop.f32.mrb[2].mxu1  ;;  %v955_v54 = vpop.f32.mrb[3].mxu0 }
  0xfe   : > { %v977_v55 = vpop.f32.mrb[3].mxu1  ;;  %v592_v56 = vadd.f32 %v953_v50, %v883_v47 }
 0x100   : > { %v632_v57 = vadd.f32 %v975_v51, %v592_v56 }
 0x102   : > { %v637_v58 = vmax.f32 %v632_v57, 0.0 }
 0x104   : > { %v638_v59 = vpack.c.bf16 %v637_v58, %v637_v58 }
 0x106   : > { %998 = vmatmul.mubr.msk.bf16.vlgmr.msra.gmra.mrb[4].mxu0 %vm678_vm1, %v638_v59 }
 0x1d9   : > { %v716_v63 = vpop.f32.mrb[4].mxu0 }
 0x1da   : > { %v717_v0 = vadd.f32 %v920_v62, %v716_v63  ;;  %v999_v1 = vpop.f32.mrb[5].mxu0 }
 0x1db   : > { %v719_v2 = vpop.f32.mrb[6].mxu0 }
 0x1dc   : > { %v722_v3 = vmax.f32 %v717_v0, 0.0  ;;  %v1000_v4 = vpop.f32.mrb[7].mxu0 }
 0x1de   : > { %v723_v5 = vpack.c.bf16 %v722_v3, %v722_v3 }
 0x1e0   : > { %1010 = vmatmul.mubr.msk.bf16.vlgmr.msra.gmra.mrb[4].mxu1 %vm678_vm1, %v723_v5 }
 0x2b3   : > { %v800_v9 = vpop.f32.mrb[4].mxu1 }
 0x2b4   : > { %v801_v10 = vadd.f32 %v926_v8, %v800_v9  ;;  %v1011_v11 = vpop.f32.mrb[5].mxu1 }
 0x2b5   : > { %v803_v12 = vpop.f32.mrb[6].mxu1 }
 0x2b6   : > { %v1012_v13 = vpop.f32.mrb[7].mxu1  ;;  %v809_v14 = vsel %vm808_vm2, %v801_v10, -1e+30 }
 0x2b7   : > { %810 = vmax.xlane.f32.xlu0 %v809_v14 }
 0x344   : > { %v811_v15 = vpop.xlane.xlu0 %810 }
 0x345   : > { %v812_v16 = vsub.f32 %v809_v14, %v811_v15 }
 0x347   : > { %v813_v17 = vmul.f32 1.442695, %v812_v16 }
 0x349   : > { %1067 = vpow2.f32 %v813_v17 }
 0x353   : > { %v1068_v18 = vpop.eup %1067 }
 0x354   : > { %v815_v19 = vsel %vm808_vm2, %v1068_v18, 0.0 }
 0x355   : > { %816 = vadd.xlane.f32.xlu0 %v815_v19 }
 0x3e2   : > { %v817_v20 = vpop.xlane.xlu0 %816 }
 0x3e3   : > { %1069 = vrcp.f32 %v817_v20 }
 0x3ed   : > { %v1070_v21 = vpop.eup %1069 }
 0x3ee   : > { %v819_v22 = vmul.f32 %v1070_v21, %v815_v19 }
 0x3f0   : > { %v820_v23 = vsel %vm808_vm2, %v819_v22, %v801_v10 }
 0x3f1   : > { %821 = vst [vmem:[%s276_s12] sm:$0xff] %v820_v23 }
 0x3f2 PF: > { %s17_s24 = sadd.s32 1, %s1077_s24  }
 0x3f3   : > { %p14_p4 = scmp.ge.s32.totalorder %s17_s24, 4  }
 0x3f5   :  { %16 = sbr.rel (!%p14_p4) target bundleno = 1 (0x1), region = 78 }

// kernel: _forward_core.9
= control target key start
LH: loop header
LB: loop body
LE: loop exit
PB: predicated region body
PF: predicated region fallthrough
CT: control target
= control target key end

     0   :  { %s124_s0 = inlined_call_operand.vmem [shape: f32[4,128], index: 0, kind: input, shape index: {}]   ;;  %s125_s1 = inlined_call_operand.vmem [shape: f32[4,128], index: 1, kind: input, shape index: {}]   ;;  %s126_s2 = inlined_call_operand.vmem [shape: f32[4,128], index: 2, kind: output, shape index: {}]  }
   0x1   :  { %v11_v0 = vld [vmem:[%s124_s0] sm:$0x1]  ;;  %v13_v1 = vld [vmem:[%s124_s0 + $0x2] sm:$0x1]  ;;  %v33_v3 = vld [vmem:[%s125_s1 + $0x3] sm:$0x1] }
   0x2   :  { %v29_v2 = vld [vmem:[%s125_s1 + $0x2] sm:$0x1]  ;;  %v34_v5 = vmul.f32 0.2, %v33_v3  ;;  %v12_v6 = vld [vmem:[%s124_s0 + $0x1] sm:$0x1]  ;;  %v15_v7 = vsub.f32 %v13_v1, %v11_v0 }
   0x3   :  { %v30_v4 = vmul.f32 0.2, %v29_v2  ;;  %v14_v8 = vld [vmem:[%s124_s0 + $0x3] sm:$0x1]  ;;  %v23_v15 = vld [vmem:[%s125_s1] sm:$0x1] }
   0x4   :  { %v17_v10 = vsub.f32 %v14_v8, %v12_v6  ;;  %v36_v11 = vmin.f32 %v34_v5, 4.1351666  ;;  %v16_v14 = vadd.f32 1.0, %v15_v7  ;;  %v26_v17 = vld [vmem:[%s125_s1 + $0x1] sm:$0x1] }
   0x5   :  { %v32_v9 = vmin.f32 %v30_v4, 4.1351666  ;;  %v24_v19 = vmul.f32 0.1, %v23_v15  ;;  %v27_v21 = vmul.f32 0.1, %v26_v17 }
   0x6   :  { %v44_v13 = vmul.f32 1.442695, %v36_v11  ;;  %v18_v16 = vadd.f32 1.0, %v17_v10  ;;  %v19_v18 = vmul.f32 0.5, %v16_v14 }
   0x7   :  { %v41_v12 = vmul.f32 1.442695, %v32_v9  ;;  %v37_v23 = vmul.f32 %v24_v19, %v16_v14 }
   0x8   :  { %v21_v20 = vmul.f32 0.5, %v18_v16  ;;  %v20_v22 = vadd.f32 %v19_v18, %v11_v0  ;;  %v39_v25 = vmul.f32 %v27_v21, %v18_v16 }
   0x9   :  { %69 = vpow2.f32 %v41_v12 }
   0xa   :  { %71 = vpow2.f32 %v44_v13  ;;  %v22_v24 = vadd.f32 %v21_v20, %v12_v6  ;;  %v38_v28 = vadd.f32 %v37_v23, %v20_v22 }
   0xc   :  { %v40_v30 = vadd.f32 %v39_v25, %v22_v24 }
  0x13   :  { %v70_v26 = vpop.eup %69 }
  0x14   :  { %v72_v27 = vpop.eup %71  ;;  %v43_v29 = vmul.f32 %v70_v26, %v16_v14 }
  0x15   :  { %v46_v31 = vmul.f32 %v72_v27, %v18_v16 }
  0x16   :  { %v47_v32 = vmul.f32 0.5, %v43_v29 }
  0x17   :  { %v52_v33 = vmul.f32 0.5, %v46_v31 }
  0x18   :  { %v48_v34 = vsub.f32 %v38_v28, %v47_v32  ;;  %v57_v35 = vadd.f32 %v47_v32, %v38_v28 }
  0x19   :  { %v53_v36 = vsub.f32 %v40_v30, %v52_v33  ;;  %v61_v37 = vadd.f32 %v52_v33, %v40_v30 }
  0x1a   :  { %v49_v38 = vmax.f32 %v48_v34, 0.0  ;;  %v58_v39 = vmax.f32 %v57_v35, 0.0 }
  0x1b   :  { %v54_v40 = vmax.f32 %v53_v36, 0.0  ;;  %v62_v41 = vmax.f32 %v61_v37, 0.0 }
  0x1c   :  { %v50_v42 = vmin.f32 %v49_v38, 63.0  ;;  %v59_v43 = vmin.f32 %v58_v39, 63.0 }
  0x1d   :  { %v55_v44 = vmin.f32 %v54_v40, 63.0  ;;  %v63_v45 = vmin.f32 %v62_v41, 63.0 }
  0x1e   :  { %51 = vst [vmem:[%s126_s2] sm:$0x1] %v50_v42  ;;  %60 = vst [vmem:[%s126_s2 + $0x2] sm:$0x1] %v59_v43 }
  0x1f   :  { %56 = vst [vmem:[%s126_s2 + $0x1] sm:$0x1] %v55_v44  ;;  %64 = vst [vmem:[%s126_s2 + $0x3] sm:$0x1] %v63_v45 }

</bundles_post_ra>
